<compile_context>
chip_gen: v5e
topology: v5e:2x2
jax: 0.10.0
libtpu: 0.0.40
codegen_flags: <defaults>
</compile_context>

<pallas_src>
import jax
import jax.numpy as jnp
from jax.experimental import pallas as pl
from jax.experimental.pallas import tpu as pltpu

BN_EPS = 1e-5
LANE = 128
VMEM_LIMIT = 48 * 1024 * 1024   # above all scoped defaults, below v7x 64 MiB physical


def _round_up(x, m):
    return (x + m - 1) // m * m


def _pad_axis(a, axis, new_size):
    pad = [(0, 0)] * a.ndim
    pad[axis] = (0, new_size - a.shape[axis])
    return jnp.pad(a, pad)


def _pick_tile(m):
    for t in (2048, 1024, 512, 256, 128, 64, 32, 16, 8):
        if m % t == 0:
            return t
    return m


# ---------------------------------------------------------------------------
# Pass 1: 3x3 conv (9 accumulated MXU matmuls) + per-channel BN partial stats
# ---------------------------------------------------------------------------
def _conv3x3_stats_kernel(x0_ref, x1_ref, x2_ref, w_ref,
                          out_ref, sum_ref, sq_ref):
    """Grid = (N, H); one output row per step.

    x{0,1,2}_ref: (1, 1, W+2, Cin)  rows h, h+1, h+2 of padded bf16 input
    w_ref:        (3, 3, Cin, Cout) bf16 HWIO weights (resident across grid)
    out_ref:      (1, 1, W, Cout)   f32 pre-BN conv output row
    sum_ref:      (1, 1, Cout)      f32 running per-channel sum        (per n)
    sq_ref:       (1, 1, Cout)      f32 running per-channel sum-of-sq  (per n)
    """
    w_out = out_ref.shape[2]
    c_out = out_ref.shape[3]
    h = pl.program_id(1)

    @pl.when(h == 0)
    def _init():
        sum_ref[...] = jnp.zeros_like(sum_ref)
        sq_ref[...] = jnp.zeros_like(sq_ref)

    x_refs = (x0_ref, x1_ref, x2_ref)
    acc = jnp.zeros((w_out, c_out), jnp.float32)
    for dy in range(3):
        for dx in range(3):
            lhs = x_refs[dy][0, 0, dx:dx + w_out, :]          # (W, Cin) bf16
            acc += jnp.dot(lhs, w_ref[dy, dx],
                           preferred_element_type=jnp.float32)

    out_ref[0, 0] = acc.astype(out_ref.dtype)
    sum_ref[0] += jnp.sum(acc, axis=0, keepdims=True)
    sq_ref[0] += jnp.sum(acc * acc, axis=0, keepdims=True)


# ---------------------------------------------------------------------------
# Pass 2: BN affine (precomputed per-channel scale/shift) + ReLU, row-tiled
# ---------------------------------------------------------------------------
def _bn_affine_relu_kernel(x_ref, scale_ref, shift_ref, o_ref):
    y = x_ref[...] * scale_ref[...] + shift_ref[...]
    o_ref[...] = jnp.maximum(y, 0.0).astype(o_ref.dtype)


def _conv_bn_relu(x_nhwc, w_hwio, gamma, beta, *, out_dtype):
    """One Conv3x3(pad=1, no bias) + BatchNorm2d(train) + ReLU layer.

    x_nhwc: (N, H, W, Cin) bf16, Cin a multiple of 128.
    w_hwio: (3, 3, Cin, Cout) bf16, Cout a multiple of 128.
    gamma/beta: (Cout,) f32.
    """
    n, h, w, cin = x_nhwc.shape
    cout = w_hwio.shape[-1]

    xp = jnp.pad(x_nhwc, ((0, 0), (1, 1), (1, 1), (0, 0)))   # spatial zero pad

    conv_out, ch_sum, ch_sq = pl.pallas_call(
        _conv3x3_stats_kernel,
        grid=(n, h),
        in_specs=[
            pl.BlockSpec((1, 1, w + 2, cin), lambda i, j: (i, j, 0, 0)),
            pl.BlockSpec((1, 1, w + 2, cin), lambda i, j: (i, j + 1, 0, 0)),
            pl.BlockSpec((1, 1, w + 2, cin), lambda i, j: (i, j + 2, 0, 0)),
            pl.BlockSpec((3, 3, cin, cout), lambda i, j: (0, 0, 0, 0)),
        ],
        out_specs=[
            pl.BlockSpec((1, 1, w, cout), lambda i, j: (i, j, 0, 0)),
            pl.BlockSpec((1, 1, cout), lambda i, j: (i, 0, 0)),
            pl.BlockSpec((1, 1, cout), lambda i, j: (i, 0, 0)),
        ],
        out_shape=[
            jax.ShapeDtypeStruct((n, h, w, cout), jnp.float32),
            jax.ShapeDtypeStruct((n, 1, cout), jnp.float32),
            jax.ShapeDtypeStruct((n, 1, cout), jnp.float32),
        ],
        compiler_params=pltpu.CompilerParams(
            dimension_semantics=("parallel", "arbitrary"),
            vmem_limit_bytes=VMEM_LIMIT,
        ),
    )(xp, xp, xp, w_hwio)

    # Finalize BN training-mode stats (biased variance over N*H*W) and fold
    # mean / var / gamma / beta into one per-channel scale & shift.
    m_count = jnp.float32(n * h * w)
    mean = jnp.sum(ch_sum[:, 0, :], axis=0) / m_count
    ex2 = jnp.sum(ch_sq[:, 0, :], axis=0) / m_count
    var = jnp.maximum(ex2 - mean * mean, 0.0)
    scale = gamma * jax.lax.rsqrt(var + BN_EPS)
    shift = beta - mean * scale

    m_rows = n * h * w
    tile_m = _pick_tile(m_rows)
    y2d = pl.pallas_call(
        _bn_affine_relu_kernel,
        grid=(m_rows // tile_m,),
        in_specs=[
            pl.BlockSpec((tile_m, cout), lambda i: (i, 0)),
            pl.BlockSpec((1, cout), lambda i: (0, 0)),
            pl.BlockSpec((1, cout), lambda i: (0, 0)),
        ],
        out_specs=pl.BlockSpec((tile_m, cout), lambda i: (i, 0)),
        out_shape=jax.ShapeDtypeStruct((m_rows, cout), out_dtype),
        compiler_params=pltpu.CompilerParams(
            dimension_semantics=("parallel",),
            vmem_limit_bytes=VMEM_LIMIT,
        ),
    )(conv_out.reshape(m_rows, cout),
      scale.reshape(1, cout).astype(jnp.float32),
      shift.reshape(1, cout).astype(jnp.float32))

    return y2d.reshape(n, h, w, cout)


def init_conv_block_params(key, in_c, out_c):
    """Synthetic parameters mirroring the PyTorch module's shapes / init scale."""
    k1, k2, k3, k4 = jax.random.split(key, 4)
    s1 = 1.0 / jnp.sqrt(in_c * 9.0)
    s2 = 1.0 / jnp.sqrt(out_c * 9.0)
    return {
        # Conv weights stored as HWIO (3, 3, Cin, Cout).
        "w1": jax.random.uniform(k1, (3, 3, in_c, out_c), jnp.float32, -s1, s1),
        "b1": jax.random.uniform(k2, (out_c,), jnp.float32, -s1, s1),
        "g1": jnp.ones((out_c,), jnp.float32),       # BN1 weight
        "beta1": jnp.zeros((out_c,), jnp.float32),   # BN1 bias
        "w2": jax.random.uniform(k3, (3, 3, out_c, out_c), jnp.float32, -s2, s2),
        "b2": jax.random.uniform(k4, (out_c,), jnp.float32, -s2, s2),
        "g2": jnp.ones((out_c,), jnp.float32),       # BN2 weight
        "beta2": jnp.zeros((out_c,), jnp.float32),   # BN2 bias
    }


@jax.jit
def conv_block_forward(x_nchw, params):
    n, cin, h, w = x_nchw.shape
    out_c = params["g1"].shape[0]
    cin_p = _round_up(cin, LANE)
    cout_p = _round_up(out_c, LANE)

    # NCHW -> NHWC (channels on the 128-lane axis); pad channels to lane
    # width; bf16 MXU operands (all accumulation / BN math stays f32).
    x = jnp.transpose(x_nchw, (0, 2, 3, 1)).astype(jnp.float32)
    x = _pad_axis(x, 3, cin_p).astype(jnp.bfloat16)

    w1 = _pad_axis(_pad_axis(params["w1"], 2, cin_p), 3, cout_p).astype(jnp.bfloat16)
    w2 = _pad_axis(_pad_axis(params["w2"], 2, cout_p), 3, cout_p).astype(jnp.bfloat16)
    g1 = _pad_axis(params["g1"].astype(jnp.float32), 0, cout_p)
    be1 = _pad_axis(params["beta1"].astype(jnp.float32), 0, cout_p)
    g2 = _pad_axis(params["g2"].astype(jnp.float32), 0, cout_p)
    be2 = _pad_axis(params["beta2"].astype(jnp.float32), 0, cout_p)

    # Conv biases (params["b1"], params["b2"]) are intentionally unused: under
    # training-mode BatchNorm a per-channel bias is exactly cancelled by the
    # mean subtraction and does not affect the variance -> identical output.
    y = _conv_bn_relu(x, w1, g1, be1, out_dtype=jnp.bfloat16)   # feeds conv2's MXU
    y = _conv_bn_relu(y, w2, g2, be2, out_dtype=jnp.float32)

    y = y[..., :out_c]                        # drop channel padding
    return jnp.transpose(y, (0, 3, 1, 2))     # back to NCHW (PyTorch convention)


def _reference_forward(x_nchw, params):
    """Pure-JAX reference with the same bf16 operand rounding as the kernel."""
    def layer(x, w_hwio, g, b):
        y = jax.lax.conv_general_dilated(
            x, w_hwio, window_strides=(1, 1), padding="SAME",
            dimension_numbers=("NHWC", "HWIO", "NHWC"),
            precision=jax.lax.Precision.HIGHEST)
        mean = jnp.mean(y, axis=(0, 1, 2))
        var = jnp.mean(jnp.square(y - mean), axis=(0, 1, 2))
        y = (y - mean) * jax.lax.rsqrt(var + BN_EPS) * g + b
        return jnp.maximum(y, 0.0)

    rb = lambda a: a.astype(jnp.bfloat16).astype(jnp.float32)
    x = rb(jnp.transpose(x_nchw, (0, 2, 3, 1)))
    y = layer(x, rb(params["w1"]), params["g1"], params["beta1"])
    y = layer(rb(y), rb(params["w2"]), params["g2"], params["beta2"])
    return jnp.transpose(y, (0, 3, 1, 2))


if __name__ == "__main__":
    N, C_IN, C_OUT, H, W = 2, 4, 8, 16, 16
    key = jax.random.PRNGKey(0)
    k_x, k_p = jax.random.split(key)
    x = jax.random.normal(k_x, (N, C_IN, H, W), jnp.float32)
    params = init_conv_block_params(k_p, C_IN, C_OUT)

    out = conv_block_forward(x, params)
    jax.block_until_ready(out)

    assert out.shape == (N, C_OUT, H, W), out.shape
    assert bool(jnp.all(out >= 0.0))            # ReLU output is non-negative
    ref = _reference_forward(x, params)
    assert bool(jnp.allclose(out, ref, atol=3e-2, rtol=3e-2)), \
        float(jnp.max(jnp.abs(out - ref)))
    print("KERNEL_OK")
</pallas_src>

<mosaic_0001>
module attributes {stable_mosaic.version = 11 : i64} {
  func.func @_conv3x3_stats_kernel(%arg0: i32, %arg1: i32, %arg2: memref<1x1x18x128xbf16, #tpu.memory_space<vmem>>, %arg3: memref<1x1x18x128xbf16, #tpu.memory_space<vmem>>, %arg4: memref<1x1x18x128xbf16, #tpu.memory_space<vmem>>, %arg5: memref<3x3x128x128xbf16, #tpu.memory_space<vmem>>, %arg6: memref<1x1x16x128xf32, #tpu.memory_space<vmem>>, %arg7: memref<1x1x128xf32, #tpu.memory_space<vmem>>, %arg8: memref<1x1x128xf32, #tpu.memory_space<vmem>>) attributes {dimension_semantics = [#tpu.dimension_semantics<parallel>, #tpu.dimension_semantics<arbitrary>], iteration_bounds = array<i64: 2, 16>, scalar_prefetch = 0 : i64, scratch_operands = 0 : i64, tpu.core_type = #tpu.core_type<tc>, window_params = [{transform_indices = @transform_0, window_bounds = array<i64: 1, 1, 18, 128>}, {transform_indices = @transform_1, window_bounds = array<i64: 1, 1, 18, 128>}, {transform_indices = @transform_2, window_bounds = array<i64: 1, 1, 18, 128>}, {pipeline_mode = #tpu.pipeline_mode<synchronous>, transform_indices = @transform_3, window_bounds = array<i64: 3, 3, 128, 128>}, {transform_indices = @transform_4, window_bounds = array<i64: 1, 1, 16, 128>}, {transform_indices = @transform_5, window_bounds = array<i64: 1, 1, 128>}, {transform_indices = @transform_6, window_bounds = array<i64: 1, 1, 128>}]} {
    %c0_i32 = arith.constant 0 : i32
    %0 = arith.cmpi eq, %arg1, %c0_i32 : i32
    %1 = arith.extui %0 : i1 to i32
    %c0_i32_0 = arith.constant 0 : i32
    %2 = arith.cmpi ne, %1, %c0_i32_0 : i32
    scf.if %2 {
      %cst_97 = arith.constant 0.000000e+00 : f32
      %78 = vector.broadcast %cst_97 : f32 to vector<1x1x128xf32>
      %c0_98 = arith.constant 0 : index
      %c0_99 = arith.constant 0 : index
      %c0_100 = arith.constant 0 : index
      %79 = vector.load %arg7[%c0_98, %c0_99, %c0_100] : memref<1x1x128xf32, #tpu.memory_space<vmem>>, vector<1x1x128xf32>
      tpu.vector_store %arg7[%c0_98, %c0_99, %c0_100], %78 {strides = array<i32>} : memref<1x1x128xf32, #tpu.memory_space<vmem>>, vector<1x1x128xf32>,
      %cst_101 = arith.constant 0.000000e+00 : f32
      %80 = vector.broadcast %cst_101 : f32 to vector<1x1x128xf32>
      %c0_102 = arith.constant 0 : index
      %c0_103 = arith.constant 0 : index
      %c0_104 = arith.constant 0 : index
      %81 = vector.load %arg8[%c0_102, %c0_103, %c0_104] : memref<1x1x128xf32, #tpu.memory_space<vmem>>, vector<1x1x128xf32>
      tpu.vector_store %arg8[%c0_102, %c0_103, %c0_104], %80 {strides = array<i32>} : memref<1x1x128xf32, #tpu.memory_space<vmem>>, vector<1x1x128xf32>,
    } else {
    }
    %cst = arith.constant 0.000000e+00 : f32
    %3 = vector.broadcast %cst : f32 to vector<16x128xf32>
    %c0 = arith.constant 0 : index
    %c0_1 = arith.constant 0 : index
    %c0_2 = arith.constant 0 : index
    %c0_3 = arith.constant 0 : index
    %4 = vector.load %arg2[%c0, %c0_1, %c0_2, %c0_3] : memref<1x1x18x128xbf16, #tpu.memory_space<vmem>>, vector<1x1x16x128xbf16>
    %5 = vector.shape_cast %4 : vector<1x1x16x128xbf16> to vector<16x128xbf16>
    %c0_4 = arith.constant 0 : index
    %c0_5 = arith.constant 0 : index
    %c0_6 = arith.constant 0 : index
    %c0_7 = arith.constant 0 : index
    %6 = vector.load %arg5[%c0_4, %c0_5, %c0_6, %c0_7] : memref<3x3x128x128xbf16, #tpu.memory_space<vmem>>, vector<1x1x128x128xbf16>
    %7 = vector.shape_cast %6 : vector<1x1x128x128xbf16> to vector<128x128xbf16>
    %cst_8 = arith.constant dense<0.000000e+00> : vector<16x128xf32>
    %8 = tpu.matmul %5, %7, %cst_8 {dimension_numbers = #tpu.dot_dimension_numbers<[1], [0], [0], [1], [0, 0, 1, 1], [], []>} : vector<16x128xbf16>, vector<128x128xbf16>, vector<16x128xf32> -> vector<16x128xf32>
    %9 = arith.addf %3, %8 : vector<16x128xf32>
    %c0_9 = arith.constant 0 : index
    %c0_10 = arith.constant 0 : index
    %c1 = arith.constant 1 : index
    %c0_11 = arith.constant 0 : index
    %10 = vector.load %arg2[%c0_9, %c0_10, %c1, %c0_11] : memref<1x1x18x128xbf16, #tpu.memory_space<vmem>>, vector<1x1x16x128xbf16>
    %11 = vector.shape_cast %10 : vector<1x1x16x128xbf16> to vector<16x128xbf16>
    %c0_12 = arith.constant 0 : index
    %c1_13 = arith.constant 1 : index
    %c0_14 = arith.constant 0 : index
    %c0_15 = arith.constant 0 : index
    %12 = vector.load %arg5[%c0_12, %c1_13, %c0_14, %c0_15] : memref<3x3x128x128xbf16, #tpu.memory_space<vmem>>, vector<1x1x128x128xbf16>
    %13 = vector.shape_cast %12 : vector<1x1x128x128xbf16> to vector<128x128xbf16>
    %cst_16 = arith.constant dense<0.000000e+00> : vector<16x128xf32>
    %14 = tpu.matmul %11, %13, %cst_16 {dimension_numbers = #tpu.dot_dimension_numbers<[1], [0], [0], [1], [0, 0, 1, 1], [], []>} : vector<16x128xbf16>, vector<128x128xbf16>, vector<16x128xf32> -> vector<16x128xf32>
    %15 = arith.addf %9, %14 : vector<16x128xf32>
    %c0_17 = arith.constant 0 : index
    %c0_18 = arith.constant 0 : index
    %c2 = arith.constant 2 : index
    %c0_19 = arith.constant 0 : index
    %16 = vector.load %arg2[%c0_17, %c0_18, %c2, %c0_19] : memref<1x1x18x128xbf16, #tpu.memory_space<vmem>>, vector<1x1x16x128xbf16>
    %17 = vector.shape_cast %16 : vector<1x1x16x128xbf16> to vector<16x128xbf16>
    %c0_20 = arith.constant 0 : index
    %c2_21 = arith.constant 2 : index
    %c0_22 = arith.constant 0 : index
    %c0_23 = arith.constant 0 : index
    %18 = vector.load %arg5[%c0_20, %c2_21, %c0_22, %c0_23] : memref<3x3x128x128xbf16, #tpu.memory_space<vmem>>, vector<1x1x128x128xbf16>
    %19 = vector.shape_cast %18 : vector<1x1x128x128xbf16> to vector<128x128xbf16>
    %cst_24 = arith.constant dense<0.000000e+00> : vector<16x128xf32>
    %20 = tpu.matmul %17, %19, %cst_24 {dimension_numbers = #tpu.dot_dimension_numbers<[1], [0], [0], [1], [0, 0, 1, 1], [], []>} : vector<16x128xbf16>, vector<128x128xbf16>, vector<16x128xf32> -> vector<16x128xf32>
    %21 = arith.addf %15, %20 : vector<16x128xf32>
    %c0_25 = arith.constant 0 : index
    %c0_26 = arith.constant 0 : index
    %c0_27 = arith.constant 0 : index
    %c0_28 = arith.constant 0 : index
    %22 = vector.load %arg3[%c0_25, %c0_26, %c0_27, %c0_28] : memref<1x1x18x128xbf16, #tpu.memory_space<vmem>>, vector<1x1x16x128xbf16>
    %23 = vector.shape_cast %22 : vector<1x1x16x128xbf16> to vector<16x128xbf16>
    %c1_29 = arith.constant 1 : index
    %c0_30 = arith.constant 0 : index
    %c0_31 = arith.constant 0 : index
    %c0_32 = arith.constant 0 : index
    %24 = vector.load %arg5[%c1_29, %c0_30, %c0_31, %c0_32] : memref<3x3x128x128xbf16, #tpu.memory_space<vmem>>, vector<1x1x128x128xbf16>
    %25 = vector.shape_cast %24 : vector<1x1x128x128xbf16> to vector<128x128xbf16>
    %cst_33 = arith.constant dense<0.000000e+00> : vector<16x128xf32>
    %26 = tpu.matmul %23, %25, %cst_33 {dimension_numbers = #tpu.dot_dimension_numbers<[1], [0], [0], [1], [0, 0, 1, 1], [], []>} : vector<16x128xbf16>, vector<128x128xbf16>, vector<16x128xf32> -> vector<16x128xf32>
    %27 = arith.addf %21, %26 : vector<16x128xf32>
    %c0_34 = arith.constant 0 : index
    %c0_35 = arith.constant 0 : index
    %c1_36 = arith.constant 1 : index
    %c0_37 = arith.constant 0 : index
    %28 = vector.load %arg3[%c0_34, %c0_35, %c1_36, %c0_37] : memref<1x1x18x128xbf16, #tpu.memory_space<vmem>>, vector<1x1x16x128xbf16>
    %29 = vector.shape_cast %28 : vector<1x1x16x128xbf16> to vector<16x128xbf16>
    %c1_38 = arith.constant 1 : index
    %c1_39 = arith.constant 1 : index
    %c0_40 = arith.constant 0 : index
    %c0_41 = arith.constant 0 : index
    %30 = vector.load %arg5[%c1_38, %c1_39, %c0_40, %c0_41] : memref<3x3x128x128xbf16, #tpu.memory_space<vmem>>, vector<1x1x128x128xbf16>
    %31 = vector.shape_cast %30 : vector<1x1x128x128xbf16> to vector<128x128xbf16>
    %cst_42 = arith.constant dense<0.000000e+00> : vector<16x128xf32>
    %32 = tpu.matmul %29, %31, %cst_42 {dimension_numbers = #tpu.dot_dimension_numbers<[1], [0], [0], [1], [0, 0, 1, 1], [], []>} : vector<16x128xbf16>, vector<128x128xbf16>, vector<16x128xf32> -> vector<16x128xf32>
    %33 = arith.addf %27, %32 : vector<16x128xf32>
    %c0_43 = arith.constant 0 : index
    %c0_44 = arith.constant 0 : index
    %c2_45 = arith.constant 2 : index
    %c0_46 = arith.constant 0 : index
    %34 = vector.load %arg3[%c0_43, %c0_44, %c2_45, %c0_46] : memref<1x1x18x128xbf16, #tpu.memory_space<vmem>>, vector<1x1x16x128xbf16>
    %35 = vector.shape_cast %34 : vector<1x1x16x128xbf16> to vector<16x128xbf16>
    %c1_47 = arith.constant 1 : index
    %c2_48 = arith.constant 2 : index
    %c0_49 = arith.constant 0 : index
    %c0_50 = arith.constant 0 : index
    %36 = vector.load %arg5[%c1_47, %c2_48, %c0_49, %c0_50] : memref<3x3x128x128xbf16, #tpu.memory_space<vmem>>, vector<1x1x128x128xbf16>
    %37 = vector.shape_cast %36 : vector<1x1x128x128xbf16> to vector<128x128xbf16>
    %cst_51 = arith.constant dense<0.000000e+00> : vector<16x128xf32>
    %38 = tpu.matmul %35, %37, %cst_51 {dimension_numbers = #tpu.dot_dimension_numbers<[1], [0], [0], [1], [0, 0, 1, 1], [], []>} : vector<16x128xbf16>, vector<128x128xbf16>, vector<16x128xf32> -> vector<16x128xf32>
    %39 = arith.addf %33, %38 : vector<16x128xf32>
    %c0_52 = arith.constant 0 : index
    %c0_53 = arith.constant 0 : index
    %c0_54 = arith.constant 0 : index
    %c0_55 = arith.constant 0 : index
    %40 = vector.load %arg4[%c0_52, %c0_53, %c0_54, %c0_55] : memref<1x1x18x128xbf16, #tpu.memory_space<vmem>>, vector<1x1x16x128xbf16>
    %41 = vector.shape_cast %40 : vector<1x1x16x128xbf16> to vector<16x128xbf16>
    %c2_56 = arith.constant 2 : index
    %c0_57 = arith.constant 0 : index
    %c0_58 = arith.constant 0 : index
    %c0_59 = arith.constant 0 : index
    %42 = vector.load %arg5[%c2_56, %c0_57, %c0_58, %c0_59] : memref<3x3x128x128xbf16, #tpu.memory_space<vmem>>, vector<1x1x128x128xbf16>
    %43 = vector.shape_cast %42 : vector<1x1x128x128xbf16> to vector<128x128xbf16>
    %cst_60 = arith.constant dense<0.000000e+00> : vector<16x128xf32>
    %44 = tpu.matmul %41, %43, %cst_60 {dimension_numbers = #tpu.dot_dimension_numbers<[1], [0], [0], [1], [0, 0, 1, 1], [], []>} : vector<16x128xbf16>, vector<128x128xbf16>, vector<16x128xf32> -> vector<16x128xf32>
    %45 = arith.addf %39, %44 : vector<16x128xf32>
    %c0_61 = arith.constant 0 : index
    %c0_62 = arith.constant 0 : index
    %c1_63 = arith.constant 1 : index
    %c0_64 = arith.constant 0 : index
    %46 = vector.load %arg4[%c0_61, %c0_62, %c1_63, %c0_64] : memref<1x1x18x128xbf16, #tpu.memory_space<vmem>>, vector<1x1x16x128xbf16>
    %47 = vector.shape_cast %46 : vector<1x1x16x128xbf16> to vector<16x128xbf16>
    %c2_65 = arith.constant 2 : index
    %c1_66 = arith.constant 1 : index
    %c0_67 = arith.constant 0 : index
    %c0_68 = arith.constant 0 : index
    %48 = vector.load %arg5[%c2_65, %c1_66, %c0_67, %c0_68] : memref<3x3x128x128xbf16, #tpu.memory_space<vmem>>, vector<1x1x128x128xbf16>
    %49 = vector.shape_cast %48 : vector<1x1x128x128xbf16> to vector<128x128xbf16>
    %cst_69 = arith.constant dense<0.000000e+00> : vector<16x128xf32>
    %50 = tpu.matmul %47, %49, %cst_69 {dimension_numbers = #tpu.dot_dimension_numbers<[1], [0], [0], [1], [0, 0, 1, 1], [], []>} : vector<16x128xbf16>, vector<128x128xbf16>, vector<16x128xf32> -> vector<16x128xf32>
    %51 = arith.addf %45, %50 : vector<16x128xf32>
    %c0_70 = arith.constant 0 : index
    %c0_71 = arith.constant 0 : index
    %c2_72 = arith.constant 2 : index
    %c0_73 = arith.constant 0 : index
    %52 = vector.load %arg4[%c0_70, %c0_71, %c2_72, %c0_73] : memref<1x1x18x128xbf16, #tpu.memory_space<vmem>>, vector<1x1x16x128xbf16>
    %53 = vector.shape_cast %52 : vector<1x1x16x128xbf16> to vector<16x128xbf16>
    %c2_74 = arith.constant 2 : index
    %c2_75 = arith.constant 2 : index
    %c0_76 = arith.constant 0 : index
    %c0_77 = arith.constant 0 : index
    %54 = vector.load %arg5[%c2_74, %c2_75, %c0_76, %c0_77] : memref<3x3x128x128xbf16, #tpu.memory_space<vmem>>, vector<1x1x128x128xbf16>
    %55 = vector.shape_cast %54 : vector<1x1x128x128xbf16> to vector<128x128xbf16>
    %cst_78 = arith.constant dense<0.000000e+00> : vector<16x128xf32>
    %56 = tpu.matmul %53, %55, %cst_78 {dimension_numbers = #tpu.dot_dimension_numbers<[1], [0], [0], [1], [0, 0, 1, 1], [], []>} : vector<16x128xbf16>, vector<128x128xbf16>, vector<16x128xf32> -> vector<16x128xf32>
    %57 = arith.addf %51, %56 : vector<16x128xf32>
    %c0_79 = arith.constant 0 : index
    %c0_80 = arith.constant 0 : index
    %c0_81 = arith.constant 0 : index
    %c0_82 = arith.constant 0 : index
    %58 = vector.load %arg6[%c0_79, %c0_80, %c0_81, %c0_82] : memref<1x1x16x128xf32, #tpu.memory_space<vmem>>, vector<1x1x16x128xf32>
    %59 = vector.shape_cast %58 : vector<1x1x16x128xf32> to vector<16x128xf32>
    %60 = vector.shape_cast %57 : vector<16x128xf32> to vector<1x1x16x128xf32>
    tpu.vector_store %arg6[%c0_79, %c0_80, %c0_81, %c0_82], %60 {strides = array<i32>} : memref<1x1x16x128xf32, #tpu.memory_space<vmem>>, vector<1x1x16x128xf32>,
    %c0_83 = arith.constant 0 : index
    %c0_84 = arith.constant 0 : index
    %c0_85 = arith.constant 0 : index
    %61 = vector.load %arg7[%c0_83, %c0_84, %c0_85] : memref<1x1x128xf32, #tpu.memory_space<vmem>>, vector<1x1x128xf32>
    %62 = vector.shape_cast %61 : vector<1x1x128xf32> to vector<1x128xf32>
    %cst_86 = arith.constant dense<0.000000e+00> : vector<128xf32>
    %63 = vector.multi_reduction <add>, %57, %cst_86 [0] : vector<16x128xf32> to vector<128xf32>
    %64 = vector.shape_cast %63 : vector<128xf32> to vector<1x128xf32>
    %65 = arith.addf %62, %64 : vector<1x128xf32>
    %c0_87 = arith.constant 0 : index
    %c0_88 = arith.constant 0 : index
    %c0_89 = arith.constant 0 : index
    %66 = vector.load %arg7[%c0_87, %c0_88, %c0_89] : memref<1x1x128xf32, #tpu.memory_space<vmem>>, vector<1x1x128xf32>
    %67 = vector.shape_cast %66 : vector<1x1x128xf32> to vector<1x128xf32>
    %68 = vector.shape_cast %65 : vector<1x128xf32> to vector<1x1x128xf32>
    tpu.vector_store %arg7[%c0_87, %c0_88, %c0_89], %68 {strides = array<i32>} : memref<1x1x128xf32, #tpu.memory_space<vmem>>, vector<1x1x128xf32>,
    %c0_90 = arith.constant 0 : index
    %c0_91 = arith.constant 0 : index
    %c0_92 = arith.constant 0 : index
    %69 = vector.load %arg8[%c0_90, %c0_91, %c0_92] : memref<1x1x128xf32, #tpu.memory_space<vmem>>, vector<1x1x128xf32>
    %70 = vector.shape_cast %69 : vector<1x1x128xf32> to vector<1x128xf32>
    %71 = arith.mulf %57, %57 : vector<16x128xf32>
    %cst_93 = arith.constant dense<0.000000e+00> : vector<128xf32>
    %72 = vector.multi_reduction <add>, %71, %cst_93 [0] : vector<16x128xf32> to vector<128xf32>
    %73 = vector.shape_cast %72 : vector<128xf32> to vector<1x128xf32>
    %74 = arith.addf %70, %73 : vector<1x128xf32>
    %c0_94 = arith.constant 0 : index
    %c0_95 = arith.constant 0 : index
    %c0_96 = arith.constant 0 : index
    %75 = vector.load %arg8[%c0_94, %c0_95, %c0_96] : memref<1x1x128xf32, #tpu.memory_space<vmem>>, vector<1x1x128xf32>
    %76 = vector.shape_cast %75 : vector<1x1x128xf32> to vector<1x128xf32>
    %77 = vector.shape_cast %74 : vector<1x128xf32> to vector<1x1x128xf32>
    tpu.vector_store %arg8[%c0_94, %c0_95, %c0_96], %77 {strides = array<i32>} : memref<1x1x128xf32, #tpu.memory_space<vmem>>, vector<1x1x128xf32>,
    return
  }
  func.func @transform_0(%arg0: i32, %arg1: i32) -> (i32, i32, i32, i32) {
    %c0_i32 = arith.constant 0 : i32
    %c0_i32_0 = arith.constant 0 : i32
    %c0_i32_1 = arith.constant 0 : i32
    return %arg0, %arg1, %c0_i32, %c0_i32_0 : i32, i32, i32, i32
  }
  func.func @transform_1(%arg0: i32, %arg1: i32) -> (i32, i32, i32, i32) {
    %c1_i32 = arith.constant 1 : i32
    %0 = arith.addi %arg1, %c1_i32 : i32
    %c0_i32 = arith.constant 0 : i32
    %c0_i32_0 = arith.constant 0 : i32
    %c0_i32_1 = arith.constant 0 : i32
    return %arg0, %0, %c0_i32, %c0_i32_0 : i32, i32, i32, i32
  }
  func.func @transform_2(%arg0: i32, %arg1: i32) -> (i32, i32, i32, i32) {
    %c2_i32 = arith.constant 2 : i32
    %0 = arith.addi %arg1, %c2_i32 : i32
    %c0_i32 = arith.constant 0 : i32
    %c0_i32_0 = arith.constant 0 : i32
    %c0_i32_1 = arith.constant 0 : i32
    return %arg0, %0, %c0_i32, %c0_i32_0 : i32, i32, i32, i32
  }
  func.func @transform_3(%arg0: i32, %arg1: i32) -> (i32, i32, i32, i32) {
    %c0_i32 = arith.constant 0 : i32
    %c0_i32_0 = arith.constant 0 : i32
    %c0_i32_1 = arith.constant 0 : i32
    %c0_i32_2 = arith.constant 0 : i32
    %c0_i32_3 = arith.constant 0 : i32
    return %c0_i32, %c0_i32_0, %c0_i32_1, %c0_i32_2 : i32, i32, i32, i32
  }
  func.func @transform_4(%arg0: i32, %arg1: i32) -> (i32, i32, i32, i32) {
    %c0_i32 = arith.constant 0 : i32
    %c0_i32_0 = arith.constant 0 : i32
    %c0_i32_1 = arith.constant 0 : i32
    return %arg0, %arg1, %c0_i32, %c0_i32_0 : i32, i32, i32, i32
  }
  func.func @transform_5(%arg0: i32, %arg1: i32) -> (i32, i32, i32) {
    %c0_i32 = arith.constant 0 : i32
    %c0_i32_0 = arith.constant 0 : i32
    %c0_i32_1 = arith.constant 0 : i32
    return %arg0, %c0_i32, %c0_i32_0 : i32, i32, i32
  }
  func.func @transform_6(%arg0: i32, %arg1: i32) -> (i32, i32, i32) {
    %c0_i32 = arith.constant 0 : i32
    %c0_i32_0 = arith.constant 0 : i32
    %c0_i32_1 = arith.constant 0 : i32
    return %arg0, %c0_i32, %c0_i32_0 : i32, i32, i32
  }
}

module attributes {stable_mosaic.version = 11 : i64} {
  func.func @_bn_affine_relu_kernel(%arg0: i32, %arg1: memref<512x128xf32, #tpu.memory_space<vmem>>, %arg2: memref<1x128xf32, #tpu.memory_space<vmem>>, %arg3: memref<1x128xf32, #tpu.memory_space<vmem>>, %arg4: memref<512x128xbf16, #tpu.memory_space<vmem>>) attributes {dimension_semantics = [#tpu.dimension_semantics<parallel>], iteration_bounds = array<i64: 1>, scalar_prefetch = 0 : i64, scratch_operands = 0 : i64, tpu.core_type = #tpu.core_type<tc>, window_params = [{transform_indices = @transform_0, window_bounds = array<i64: 512, 128>}, {pipeline_mode = #tpu.pipeline_mode<synchronous>, transform_indices = @transform_1, window_bounds = array<i64: 1, 128>}, {pipeline_mode = #tpu.pipeline_mode<synchronous>, transform_indices = @transform_2, window_bounds = array<i64: 1, 128>}, {transform_indices = @transform_3, window_bounds = array<i64: 512, 128>}]} {
    %c0 = arith.constant 0 : index
    %c0_0 = arith.constant 0 : index
    %0 = vector.load %arg1[%c0, %c0_0] : memref<512x128xf32, #tpu.memory_space<vmem>>, vector<512x128xf32>
    %c0_1 = arith.constant 0 : index
    %c0_2 = arith.constant 0 : index
    %1 = vector.load %arg2[%c0_1, %c0_2] : memref<1x128xf32, #tpu.memory_space<vmem>>, vector<1x128xf32>
    %2 = vector.broadcast %1 : vector<1x128xf32> to vector<512x128xf32>
    %3 = arith.mulf %0, %2 : vector<512x128xf32>
    %c0_3 = arith.constant 0 : index
    %c0_4 = arith.constant 0 : index
    %4 = vector.load %arg3[%c0_3, %c0_4] : memref<1x128xf32, #tpu.memory_space<vmem>>, vector<1x128xf32>
    %5 = vector.broadcast %4 : vector<1x128xf32> to vector<512x128xf32>
    %6 = arith.addf %3, %5 : vector<512x128xf32>
    %cst = arith.constant 0.000000e+00 : f32
    %7 = vector.broadcast %cst : f32 to vector<512x128xf32>
    %8 = arith.maximumf %6, %7 : vector<512x128xf32>
    %9 = arith.truncf %8 : vector<512x128xf32> to vector<512x128xbf16>
    %c0_5 = arith.constant 0 : index
    %c0_6 = arith.constant 0 : index
    %10 = vector.load %arg4[%c0_5, %c0_6] : memref<512x128xbf16, #tpu.memory_space<vmem>>, vector<512x128xbf16>
    tpu.vector_store %arg4[%c0_5, %c0_6], %9 {strides = array<i32>} : memref<512x128xbf16, #tpu.memory_space<vmem>>, vector<512x128xbf16>,
    return
  }
  func.func @transform_0(%arg0: i32) -> (i32, i32) {
    %c0_i32 = arith.constant 0 : i32
    %c0_i32_0 = arith.constant 0 : i32
    return %arg0, %c0_i32 : i32, i32
  }
  func.func @transform_1(%arg0: i32) -> (i32, i32) {
    %c0_i32 = arith.constant 0 : i32
    %c0_i32_0 = arith.constant 0 : i32
    %c0_i32_1 = arith.constant 0 : i32
    return %c0_i32, %c0_i32_0 : i32, i32
  }
  func.func @transform_2(%arg0: i32) -> (i32, i32) {
    %c0_i32 = arith.constant 0 : i32
    %c0_i32_0 = arith.constant 0 : i32
    %c0_i32_1 = arith.constant 0 : i32
    return %c0_i32, %c0_i32_0 : i32, i32
  }
  func.func @transform_3(%arg0: i32) -> (i32, i32) {
    %c0_i32 = arith.constant 0 : i32
    %c0_i32_0 = arith.constant 0 : i32
    return %arg0, %c0_i32 : i32, i32
  }
}

module attributes {stable_mosaic.version = 11 : i64} {
  func.func @_bn_affine_relu_kernel(%arg0: i32, %arg1: memref<512x128xf32, #tpu.memory_space<vmem>>, %arg2: memref<1x128xf32, #tpu.memory_space<vmem>>, %arg3: memref<1x128xf32, #tpu.memory_space<vmem>>, %arg4: memref<512x128xf32, #tpu.memory_space<vmem>>) attributes {dimension_semantics = [#tpu.dimension_semantics<parallel>], iteration_bounds = array<i64: 1>, scalar_prefetch = 0 : i64, scratch_operands = 0 : i64, tpu.core_type = #tpu.core_type<tc>, window_params = [{transform_indices = @transform_0, window_bounds = array<i64: 512, 128>}, {pipeline_mode = #tpu.pipeline_mode<synchronous>, transform_indices = @transform_1, window_bounds = array<i64: 1, 128>}, {pipeline_mode = #tpu.pipeline_mode<synchronous>, transform_indices = @transform_2, window_bounds = array<i64: 1, 128>}, {transform_indices = @transform_3, window_bounds = array<i64: 512, 128>}]} {
    %c0 = arith.constant 0 : index
    %c0_0 = arith.constant 0 : index
    %0 = vector.load %arg1[%c0, %c0_0] : memref<512x128xf32, #tpu.memory_space<vmem>>, vector<512x128xf32>
    %c0_1 = arith.constant 0 : index
    %c0_2 = arith.constant 0 : index
    %1 = vector.load %arg2[%c0_1, %c0_2] : memref<1x128xf32, #tpu.memory_space<vmem>>, vector<1x128xf32>
    %2 = vector.broadcast %1 : vector<1x128xf32> to vector<512x128xf32>
    %3 = arith.mulf %0, %2 : vector<512x128xf32>
    %c0_3 = arith.constant 0 : index
    %c0_4 = arith.constant 0 : index
    %4 = vector.load %arg3[%c0_3, %c0_4] : memref<1x128xf32, #tpu.memory_space<vmem>>, vector<1x128xf32>
    %5 = vector.broadcast %4 : vector<1x128xf32> to vector<512x128xf32>
    %6 = arith.addf %3, %5 : vector<512x128xf32>
    %cst = arith.constant 0.000000e+00 : f32
    %7 = vector.broadcast %cst : f32 to vector<512x128xf32>
    %8 = arith.maximumf %6, %7 : vector<512x128xf32>
    %c0_5 = arith.constant 0 : index
    %c0_6 = arith.constant 0 : index
    %9 = vector.load %arg4[%c0_5, %c0_6] : memref<512x128xf32, #tpu.memory_space<vmem>>, vector<512x128xf32>
    tpu.vector_store %arg4[%c0_5, %c0_6], %8 {strides = array<i32>} : memref<512x128xf32, #tpu.memory_space<vmem>>, vector<512x128xf32>,
    return
  }
  func.func @transform_0(%arg0: i32) -> (i32, i32) {
    %c0_i32 = arith.constant 0 : i32
    %c0_i32_0 = arith.constant 0 : i32
    return %arg0, %c0_i32 : i32, i32
  }
  func.func @transform_1(%arg0: i32) -> (i32, i32) {
    %c0_i32 = arith.constant 0 : i32
    %c0_i32_0 = arith.constant 0 : i32
    %c0_i32_1 = arith.constant 0 : i32
    return %c0_i32, %c0_i32_0 : i32, i32
  }
  func.func @transform_2(%arg0: i32) -> (i32, i32) {
    %c0_i32 = arith.constant 0 : i32
    %c0_i32_0 = arith.constant 0 : i32
    %c0_i32_1 = arith.constant 0 : i32
    return %c0_i32, %c0_i32_0 : i32, i32
  }
  func.func @transform_3(%arg0: i32) -> (i32, i32) {
    %c0_i32 = arith.constant 0 : i32
    %c0_i32_0 = arith.constant 0 : i32
    return %arg0, %c0_i32 : i32, i32
  }
}

</mosaic_0001>

<bundles_post_ra>
// kernel: conv_block_forward.5
= control target key start
LH: loop header
LB: loop body
LE: loop exit
PB: predicated region body
PF: predicated region fallthrough
CT: control target
= control target key end

     0   :  { %s1049_s0 = inlined_call_operand.vmem [shape: f32[512,128], index: 0, kind: input, shape index: {}]   ;;  %s1050_s1 = inlined_call_operand.vmem [shape: f32[1,128], index: 1, kind: input, shape index: {}]   ;;  %s1051_s2 = inlined_call_operand.vmem [shape: f32[1,128], index: 2, kind: input, shape index: {}]   ;;  %s1052_s3 = inlined_call_operand.vmem [shape: bf16[512,128], index: 3, kind: output, shape index: {}]  }
   0x1   :  { %v14_v0 = vld [vmem:[%s1049_s0] sm:$0xff]  ;;  %v15_v1 = vld [vmem:[%s1049_s0 + $0x8] sm:$0xff]  ;;  %v16_v4 = vld [vmem:[%s1049_s0 + $0x10] sm:$0xff] }
   0x2   :  { %v632_v2 = vld [vmem:[%s1050_s1] ss:$0 sm:$0xff]  ;;  %v17_v5 = vld [vmem:[%s1049_s0 + $0x18] sm:$0xff]  ;;  %v19_v11 = vld [vmem:[%s1049_s0 + $0x28] sm:$0xff] }
   0x3   :  { %v637_v3 = vld [vmem:[%s1051_s2] ss:$0 sm:$0xff]  ;;  %v82_v7 = vmul.f32 %v632_v2, %v14_v0  ;;  %v83_v8 = vmul.f32 %v632_v2, %v15_v1  ;;  %v84_v9 = vmul.f32 %v632_v2, %v16_v4  ;;  %v85_v10 = vmul.f32 %v632_v2, %v17_v5  ;;  %v20_v12 = vld [vmem:[%s1049_s0 + $0x30] sm:$0xff]  ;;  %v21_v13 = vld [vmem:[%s1049_s0 + $0x38] sm:$0xff] }
   0x4   :  { %v18_v6 = vld [vmem:[%s1049_s0 + $0x20] sm:$0xff]  ;;  %v87_v15 = vmul.f32 %v632_v2, %v19_v11  ;;  %v88_v16 = vmul.f32 %v632_v2, %v20_v12  ;;  %v89_v17 = vmul.f32 %v632_v2, %v21_v13  ;;  %v23_v27 = vld [vmem:[%s1049_s0 + $0x48] sm:$0xff]  ;;  %v24_v32 = vld [vmem:[%s1049_s0 + $0x50] sm:$0xff] }
   0x5   :  { %v86_v14 = vmul.f32 %v632_v2, %v18_v6  ;;  %v150_v18 = vadd.f32 %v637_v3, %v82_v7  ;;  %v151_v19 = vadd.f32 %v637_v3, %v83_v8  ;;  %v152_v20 = vadd.f32 %v637_v3, %v84_v9  ;;  %v22_v26 = vld [vmem:[%s1049_s0 + $0x40] sm:$0xff]  ;;  %v25_v33 = vld [vmem:[%s1049_s0 + $0x58] sm:$0xff]  ;;  %v27_v39 = vld [vmem:[%s1049_s0 + $0x68] sm:$0xff] }
   0x6   :  { %v153_v21 = vadd.f32 %v637_v3, %v85_v10  ;;  %v155_v23 = vadd.f32 %v637_v3, %v87_v15  ;;  %v156_v24 = vadd.f32 %v637_v3, %v88_v16  ;;  %v157_v25 = vadd.f32 %v637_v3, %v89_v17  ;;  %v26_v38 = vld [vmem:[%s1049_s0 + $0x60] sm:$0xff]  ;;  %v28_v44 = vld [vmem:[%s1049_s0 + $0x70] sm:$0xff]  ;;  %v29_v45 = vld [vmem:[%s1049_s0 + $0x78] sm:$0xff] }
   0x7   :  { %v154_v22 = vadd.f32 %v637_v3, %v86_v14  ;;  %v214_v28 = vmax.f32 %v150_v18, 0.0  ;;  %v215_v29 = vmax.f32 %v151_v19, 0.0  ;;  %v216_v30 = vmax.f32 %v152_v20, 0.0  ;;  %v30_v58 = vld [vmem:[%s1049_s0 + $0x80] sm:$0xff]  ;;  %v31_v63 = vld [vmem:[%s1049_s0 + $0x88] sm:$0xff]  ;;  %v32_v6 = vld [vmem:[%s1049_s0 + $0x90] sm:$0xff] }
   0x8   :  { %v217_v31 = vmax.f32 %v153_v21, 0.0  ;;  %v219_v35 = vmax.f32 %v155_v23, 0.0  ;;  %v220_v36 = vmax.f32 %v156_v24, 0.0  ;;  %v221_v37 = vmax.f32 %v157_v25, 0.0  ;;  %v33_v7 = vld [vmem:[%s1049_s0 + $0x98] sm:$0xff]  ;;  %v34_v12 = vld [vmem:[%s1049_s0 + $0xa0] sm:$0xff] }
   0x9   :  { %v218_v34 = vmax.f32 %v154_v22, 0.0  ;;  %v413_v40 = vpack.c.bf16 %v215_v29, %v214_v28  ;;  %v90_v42 = vmul.f32 %v632_v2, %v22_v26  ;;  %v91_v43 = vmul.f32 %v632_v2, %v23_v27  ;;  %v35_v13 = vld [vmem:[%s1049_s0 + $0xa8] sm:$0xff]  ;;  %v36_v18 = vld [vmem:[%s1049_s0 + $0xb0] sm:$0xff]  ;;  %v37_v23 = vld [vmem:[%s1049_s0 + $0xb8] sm:$0xff] }
   0xa   :  { %v418_v41 = vpack.c.bf16 %v217_v31, %v216_v30  ;;  %v428_v47 = vpack.c.bf16 %v221_v37, %v220_v36  ;;  %v92_v48 = vmul.f32 %v632_v2, %v24_v32  ;;  %v93_v49 = vmul.f32 %v632_v2, %v25_v33  ;;  %v38_v28 = vld [vmem:[%s1049_s0 + $0xc0] sm:$0xff]  ;;  %v39_v37 = vld [vmem:[%s1049_s0 + $0xc8] sm:$0xff] }
   0xb   :  { %v423_v46 = vpack.c.bf16 %v219_v35, %v218_v34  ;;  %414 = vst [vmem:[%s1052_s3] sm:$0xff] %v413_v40   ;;  %v158_v50 = vadd.f32 %v637_v3, %v90_v42  ;;  %v159_v51 = vadd.f32 %v637_v3, %v91_v43  ;;  %v94_v52 = vmul.f32 %v632_v2, %v26_v38  ;;  %v40_v42 = vld [vmem:[%s1049_s0 + $0xd0] sm:$0xff]  ;;  %v41_v43 = vld [vmem:[%s1049_s0 + $0xd8] sm:$0xff] }
   0xc   :  { %v95_v53 = vmul.f32 %v632_v2, %v27_v39  ;;  %570 = vst [vmem:[%s1052_s3 + $0x8] sm:$0xff] %v418_v41   ;;  %v160_v54 = vadd.f32 %v637_v3, %v92_v48  ;;  %v161_v55 = vadd.f32 %v637_v3, %v93_v49  ;;  %v96_v56 = vmul.f32 %v632_v2, %v28_v44  ;;  %v42_v48 = vld [vmem:[%s1049_s0 + $0xe0] sm:$0xff]  ;;  %v43_v49 = vld [vmem:[%s1049_s0 + $0xe8] sm:$0xff] }
   0xd   :  { %v97_v57 = vmul.f32 %v632_v2, %v29_v45  ;;  %571 = vst [vmem:[%s1052_s3 + $0x10] sm:$0xff] %v423_v46   ;;  %v222_v59 = vmax.f32 %v158_v50, 0.0  ;;  %v223_v60 = vmax.f32 %v159_v51, 0.0  ;;  %v162_v61 = vadd.f32 %v637_v3, %v94_v52 }
   0xe   :  { %v163_v62 = vadd.f32 %v637_v3, %v95_v53  ;;  %572 = vst [vmem:[%s1052_s3 + $0x18] sm:$0xff] %v428_v47   ;;  %v224_v0 = vmax.f32 %v160_v54, 0.0  ;;  %v225_v1 = vmax.f32 %v161_v55, 0.0  ;;  %v164_v4 = vadd.f32 %v637_v3, %v96_v56  ;;  %v44_v54 = vld [vmem:[%s1049_s0 + $0xf0] sm:$0xff] }
   0xf   :  { %v165_v5 = vadd.f32 %v637_v3, %v97_v57  ;;  %v433_v8 = vpack.c.bf16 %v223_v60, %v222_v59  ;;  %v226_v9 = vmax.f32 %v162_v61, 0.0  ;;  %v98_v11 = vmul.f32 %v632_v2, %v30_v58  ;;  %v45_v59 = vld [vmem:[%s1049_s0 + $0xf8] sm:$0xff] }
  0x10   :  { %v227_v10 = vmax.f32 %v163_v62, 0.0  ;;  %v438_v14 = vpack.c.bf16 %v225_v1, %v224_v0  ;;  %v228_v15 = vmax.f32 %v164_v4, 0.0  ;;  %v99_v17 = vmul.f32 %v632_v2, %v31_v63  ;;  %v46_v0 = vld [vmem:[%s1049_s0 + $0x100] sm:$0xff] }
  0x11   :  { %v229_v16 = vmax.f32 %v165_v5, 0.0  ;;  %573 = vst [vmem:[%s1052_s3 + $0x20] sm:$0xff] %v433_v8   ;;  %v166_v20 = vadd.f32 %v637_v3, %v98_v11  ;;  %v100_v21 = vmul.f32 %v632_v2, %v32_v6  ;;  %v101_v22 = vmul.f32 %v632_v2, %v33_v7  ;;  %v47_v11 = vld [vmem:[%s1049_s0 + $0x108] sm:$0xff] }
  0x12   :  { %v443_v19 = vpack.c.bf16 %v227_v10, %v226_v9  ;;  %574 = vst [vmem:[%s1052_s3 + $0x28] sm:$0xff] %v438_v14   ;;  %v167_v25 = vadd.f32 %v637_v3, %v99_v17  ;;  %v102_v26 = vmul.f32 %v632_v2, %v34_v12  ;;  %v103_v27 = vmul.f32 %v632_v2, %v35_v13  ;;  %v49_v17 = vld [vmem:[%s1049_s0 + $0x118] sm:$0xff] }
  0x13   :  { %v448_v24 = vpack.c.bf16 %v229_v16, %v228_v15  ;;  %v230_v29 = vmax.f32 %v166_v20, 0.0  ;;  %v168_v30 = vadd.f32 %v637_v3, %v100_v21  ;;  %v169_v31 = vadd.f32 %v637_v3, %v101_v22  ;;  %v48_v16 = vld [vmem:[%s1049_s0 + $0x110] sm:$0xff]  ;;  %v50_v22 = vld [vmem:[%s1049_s0 + $0x120] sm:$0xff] }
  0x14   :  { %575 = vst [vmem:[%s1052_s3 + $0x30] sm:$0xff] %v443_v19   ;;  %v104_v32 = vmul.f32 %v632_v2, %v36_v18  ;;  %v231_v33 = vmax.f32 %v167_v25, 0.0  ;;  %v170_v34 = vadd.f32 %v637_v3, %v102_v26  ;;  %v171_v35 = vadd.f32 %v637_v3, %v103_v27 }
  0x15   :  { %576 = vst [vmem:[%s1052_s3 + $0x38] sm:$0xff] %v448_v24   ;;  %v105_v36 = vmul.f32 %v632_v2, %v37_v23  ;;  %v232_v38 = vmax.f32 %v168_v30, 0.0  ;;  %v233_v39 = vmax.f32 %v169_v31, 0.0  ;;  %v106_v41 = vmul.f32 %v632_v2, %v38_v28  ;;  %v51_v23 = vld [vmem:[%s1049_s0 + $0x128] sm:$0xff]  ;;  %v52_v28 = vld [vmem:[%s1049_s0 + $0x130] sm:$0xff] }
  0x16   :  { %v172_v40 = vadd.f32 %v637_v3, %v104_v32  ;;  %v453_v44 = vpack.c.bf16 %v231_v33, %v230_v29  ;;  %v234_v45 = vmax.f32 %v170_v34, 0.0  ;;  %v235_v46 = vmax.f32 %v171_v35, 0.0  ;;  %v53_v33 = vld [vmem:[%s1049_s0 + $0x138] sm:$0xff] }
  0x17   :  { %v173_v47 = vadd.f32 %v637_v3, %v105_v36  ;;  %v458_v50 = vpack.c.bf16 %v233_v39, %v232_v38  ;;  %v107_v52 = vmul.f32 %v632_v2, %v39_v37  ;;  %v174_v53 = vadd.f32 %v637_v3, %v106_v41  ;;  %v54_v38 = vld [vmem:[%s1049_s0 + $0x140] sm:$0xff] }
  0x18   :  { %v236_v51 = vmax.f32 %v172_v40, 0.0  ;;  %577 = vst [vmem:[%s1052_s3 + $0x40] sm:$0xff] %v453_v44   ;;  %v463_v55 = vpack.c.bf16 %v235_v46, %v234_v45  ;;  %v108_v57 = vmul.f32 %v632_v2, %v40_v42  ;;  %v109_v58 = vmul.f32 %v632_v2, %v41_v43 }
  0x19   :  { %v237_v56 = vmax.f32 %v173_v47, 0.0  ;;  %578 = vst [vmem:[%s1052_s3 + $0x48] sm:$0xff] %v458_v50   ;;  %v175_v60 = vadd.f32 %v637_v3, %v107_v52  ;;  %v238_v61 = vmax.f32 %v174_v53, 0.0  ;;  %v110_v62 = vmul.f32 %v632_v2, %v42_v48  ;;  %v55_v47 = vld [vmem:[%s1049_s0 + $0x148] sm:$0xff]  ;;  %v56_v52 = vld [vmem:[%s1049_s0 + $0x150] sm:$0xff]  ;;  %v57_v53 = vld [vmem:[%s1049_s0 + $0x158] sm:$0xff] }
  0x1a   :  { %v111_v63 = vmul.f32 %v632_v2, %v43_v49  ;;  %579 = vst [vmem:[%s1052_s3 + $0x50] sm:$0xff] %v463_v55   ;;  %v176_v4 = vadd.f32 %v637_v3, %v108_v57  ;;  %v177_v5 = vadd.f32 %v637_v3, %v109_v58  ;;  %v112_v6 = vmul.f32 %v632_v2, %v44_v54  ;;  %v58_v58 = vld [vmem:[%s1049_s0 + $0x160] sm:$0xff] }
  0x1b   :  { %v468_v1 = vpack.c.bf16 %v237_v56, %v236_v51  ;;  %v239_v7 = vmax.f32 %v175_v60, 0.0  ;;  %v178_v8 = vadd.f32 %v637_v3, %v110_v62  ;;  %v113_v10 = vmul.f32 %v632_v2, %v45_v59  ;;  %v59_v59 = vld [vmem:[%s1049_s0 + $0x168] sm:$0xff] }
  0x1c   :  { %v179_v9 = vadd.f32 %v637_v3, %v111_v63  ;;  %v240_v12 = vmax.f32 %v176_v4, 0.0  ;;  %v241_v13 = vmax.f32 %v177_v5, 0.0  ;;  %v180_v14 = vadd.f32 %v637_v3, %v112_v6 }
  0x1d   :  { %580 = vst [vmem:[%s1052_s3 + $0x58] sm:$0xff] %v468_v1   ;;  %v114_v15 = vmul.f32 %v632_v2, %v46_v0  ;;  %v473_v18 = vpack.c.bf16 %v239_v7, %v238_v61  ;;  %v242_v19 = vmax.f32 %v178_v8, 0.0  ;;  %v181_v21 = vadd.f32 %v637_v3, %v113_v10  ;;  %v60_v0 = vld [vmem:[%s1049_s0 + $0x170] sm:$0xff]  ;;  %v61_v7 = vld [vmem:[%s1049_s0 + $0x178] sm:$0xff] }
  0x1e   :  { %v243_v20 = vmax.f32 %v179_v9, 0.0  ;;  %v478_v24 = vpack.c.bf16 %v241_v13, %v240_v12  ;;  %v244_v25 = vmax.f32 %v180_v14, 0.0  ;;  %v115_v26 = vmul.f32 %v632_v2, %v47_v11  ;;  %v62_v12 = vld [vmem:[%s1049_s0 + $0x180] sm:$0xff] }
  0x1f   :  { %v182_v27 = vadd.f32 %v637_v3, %v114_v15  ;;  %581 = vst [vmem:[%s1052_s3 + $0x60] sm:$0xff] %v473_v18   ;;  %v245_v30 = vmax.f32 %v181_v21, 0.0  ;;  %v116_v31 = vmul.f32 %v632_v2, %v48_v16  ;;  %v117_v32 = vmul.f32 %v632_v2, %v49_v17  ;;  %v63_v21 = vld [vmem:[%s1049_s0 + $0x188] sm:$0xff] }
  0x20   :  { %v483_v29 = vpack.c.bf16 %v243_v20, %v242_v19  ;;  %582 = vst [vmem:[%s1052_s3 + $0x68] sm:$0xff] %v478_v24   ;;  %v183_v34 = vadd.f32 %v637_v3, %v115_v26  ;;  %v118_v36 = vmul.f32 %v632_v2, %v50_v22  ;;  %v119_v37 = vmul.f32 %v632_v2, %v51_v23  ;;  %v64_v26 = vld [vmem:[%s1049_s0 + $0x190] sm:$0xff] }
  0x21   :  { %v246_v35 = vmax.f32 %v182_v27, 0.0  ;;  %v488_v39 = vpack.c.bf16 %v245_v30, %v244_v25  ;;  %v184_v40 = vadd.f32 %v637_v3, %v116_v31  ;;  %v185_v41 = vadd.f32 %v637_v3, %v117_v32  ;;  %v65_v27 = vld [vmem:[%s1049_s0 + $0x198] sm:$0xff]  ;;  %v66_v32 = vld [vmem:[%s1049_s0 + $0x1a0] sm:$0xff] }
  0x22   :  { %583 = vst [vmem:[%s1052_s3 + $0x70] sm:$0xff] %v483_v29   ;;  %v120_v42 = vmul.f32 %v632_v2, %v52_v28  ;;  %v247_v43 = vmax.f32 %v183_v34, 0.0  ;;  %v186_v44 = vadd.f32 %v637_v3, %v118_v36  ;;  %v187_v45 = vadd.f32 %v637_v3, %v119_v37 }
  0x23   :  { %v121_v46 = vmul.f32 %v632_v2, %v53_v33  ;;  %584 = vst [vmem:[%s1052_s3 + $0x78] sm:$0xff] %v488_v39   ;;  %v248_v48 = vmax.f32 %v184_v40, 0.0  ;;  %v249_v49 = vmax.f32 %v185_v41, 0.0  ;;  %v122_v51 = vmul.f32 %v632_v2, %v54_v38  ;;  %v67_v33 = vld [vmem:[%s1049_s0 + $0x1a8] sm:$0xff]  ;;  %v68_v38 = vld [vmem:[%s1049_s0 + $0x1b0] sm:$0xff] }
  0x24   :  { %v188_v50 = vadd.f32 %v637_v3, %v120_v42  ;;  %v493_v54 = vpack.c.bf16 %v247_v43, %v246_v35  ;;  %v250_v55 = vmax.f32 %v186_v44, 0.0  ;;  %v251_v56 = vmax.f32 %v187_v45, 0.0  ;;  %v69_v43 = vld [vmem:[%s1049_s0 + $0x1b8] sm:$0xff] }
  0x25   :  { %v189_v57 = vadd.f32 %v637_v3, %v121_v46  ;;  %v498_v60 = vpack.c.bf16 %v249_v49, %v248_v48  ;;  %v123_v62 = vmul.f32 %v632_v2, %v55_v47  ;;  %v190_v63 = vadd.f32 %v637_v3, %v122_v51  ;;  %v70_v48 = vld [vmem:[%s1049_s0 + $0x1c0] sm:$0xff] }
  0x26   :  { %v252_v61 = vmax.f32 %v188_v50, 0.0  ;;  %585 = vst [vmem:[%s1052_s3 + $0x80] sm:$0xff] %v493_v54   ;;  %v503_v1 = vpack.c.bf16 %v251_v56, %v250_v55  ;;  %v124_v5 = vmul.f32 %v632_v2, %v56_v52  ;;  %v125_v6 = vmul.f32 %v632_v2, %v57_v53 }
  0x27   :  { %v253_v4 = vmax.f32 %v189_v57, 0.0  ;;  %586 = vst [vmem:[%s1052_s3 + $0x88] sm:$0xff] %v498_v60   ;;  %v191_v8 = vadd.f32 %v637_v3, %v123_v62  ;;  %v254_v9 = vmax.f32 %v190_v63, 0.0  ;;  %v126_v10 = vmul.f32 %v632_v2, %v58_v58  ;;  %v71_v57 = vld [vmem:[%s1049_s0 + $0x1c8] sm:$0xff]  ;;  %v72_v62 = vld [vmem:[%s1049_s0 + $0x1d0] sm:$0xff]  ;;  %v73_v63 = vld [vmem:[%s1049_s0 + $0x1d8] sm:$0xff] }
  0x28   :  { %v127_v11 = vmul.f32 %v632_v2, %v59_v59  ;;  %587 = vst [vmem:[%s1052_s3 + $0x90] sm:$0xff] %v503_v1   ;;  %v192_v14 = vadd.f32 %v637_v3, %v124_v5  ;;  %v193_v15 = vadd.f32 %v637_v3, %v125_v6  ;;  %v128_v16 = vmul.f32 %v632_v2, %v60_v0  ;;  %v74_v6 = vld [vmem:[%s1049_s0 + $0x1e0] sm:$0xff] }
  0x29   :  { %v508_v13 = vpack.c.bf16 %v253_v4, %v252_v61  ;;  %v255_v17 = vmax.f32 %v191_v8, 0.0  ;;  %v194_v18 = vadd.f32 %v637_v3, %v126_v10  ;;  %v129_v20 = vmul.f32 %v632_v2, %v61_v7  ;;  %v75_v7 = vld [vmem:[%s1049_s0 + $0x1e8] sm:$0xff] }
  0x2a   :  { %v195_v19 = vadd.f32 %v637_v3, %v127_v11  ;;  %v256_v22 = vmax.f32 %v192_v14, 0.0  ;;  %v257_v23 = vmax.f32 %v193_v15, 0.0  ;;  %v196_v24 = vadd.f32 %v637_v3, %v128_v16 }
  0x2b   :  { %588 = vst [vmem:[%s1052_s3 + $0x98] sm:$0xff] %v508_v13   ;;  %v130_v25 = vmul.f32 %v632_v2, %v62_v12  ;;  %v513_v28 = vpack.c.bf16 %v255_v17, %v254_v9  ;;  %v258_v29 = vmax.f32 %v194_v18, 0.0  ;;  %v197_v31 = vadd.f32 %v637_v3, %v129_v20  ;;  %v76_v12 = vld [vmem:[%s1049_s0 + $0x1f0] sm:$0xff]  ;;  %v77_v17 = vld [vmem:[%s1049_s0 + $0x1f8] sm:$0xff] }
  0x2c   :  { %v259_v30 = vmax.f32 %v195_v19, 0.0  ;;  %v518_v34 = vpack.c.bf16 %v257_v23, %v256_v22  ;;  %v260_v35 = vmax.f32 %v196_v24, 0.0  ;;  %v131_v36 = vmul.f32 %v632_v2, %v63_v21 }
  0x2d   :  { %v198_v37 = vadd.f32 %v637_v3, %v130_v25  ;;  %589 = vst [vmem:[%s1052_s3 + $0xa0] sm:$0xff] %v513_v28   ;;  %v261_v40 = vmax.f32 %v197_v31, 0.0  ;;  %v132_v41 = vmul.f32 %v632_v2, %v64_v26  ;;  %v133_v42 = vmul.f32 %v632_v2, %v65_v27 }
  0x2e   :  { %v523_v39 = vpack.c.bf16 %v259_v30, %v258_v29  ;;  %590 = vst [vmem:[%s1052_s3 + $0xa8] sm:$0xff] %v518_v34   ;;  %v199_v44 = vadd.f32 %v637_v3, %v131_v36  ;;  %v134_v46 = vmul.f32 %v632_v2, %v66_v32  ;;  %v135_v47 = vmul.f32 %v632_v2, %v67_v33 }
  0x2f   :  { %v262_v45 = vmax.f32 %v198_v37, 0.0  ;;  %v528_v49 = vpack.c.bf16 %v261_v40, %v260_v35  ;;  %v200_v50 = vadd.f32 %v637_v3, %v132_v41  ;;  %v201_v51 = vadd.f32 %v637_v3, %v133_v42 }
  0x30   :  { %591 = vst [vmem:[%s1052_s3 + $0xb0] sm:$0xff] %v523_v39   ;;  %v136_v52 = vmul.f32 %v632_v2, %v68_v38  ;;  %v263_v53 = vmax.f32 %v199_v44, 0.0  ;;  %v202_v54 = vadd.f32 %v637_v3, %v134_v46  ;;  %v203_v55 = vadd.f32 %v637_v3, %v135_v47 }
  0x31   :  { %v137_v56 = vmul.f32 %v632_v2, %v69_v43  ;;  %592 = vst [vmem:[%s1052_s3 + $0xb8] sm:$0xff] %v528_v49   ;;  %v264_v58 = vmax.f32 %v200_v50, 0.0  ;;  %v265_v59 = vmax.f32 %v201_v51, 0.0  ;;  %v138_v61 = vmul.f32 %v632_v2, %v70_v48 }
  0x32   :  { %v204_v60 = vadd.f32 %v637_v3, %v136_v52  ;;  %v533_v0 = vpack.c.bf16 %v263_v53, %v262_v45  ;;  %v266_v1 = vmax.f32 %v202_v54, 0.0  ;;  %v267_v4 = vmax.f32 %v203_v55, 0.0 }
  0x33   :  { %v205_v5 = vadd.f32 %v637_v3, %v137_v56  ;;  %v538_v8 = vpack.c.bf16 %v265_v59, %v264_v58  ;;  %v139_v10 = vmul.f32 %v632_v2, %v71_v57  ;;  %v206_v11 = vadd.f32 %v637_v3, %v138_v61 }
  0x34   :  { %v268_v9 = vmax.f32 %v204_v60, 0.0  ;;  %593 = vst [vmem:[%s1052_s3 + $0xc0] sm:$0xff] %v533_v0   ;;  %v543_v13 = vpack.c.bf16 %v267_v4, %v266_v1  ;;  %v140_v15 = vmul.f32 %v632_v2, %v72_v62  ;;  %v141_v16 = vmul.f32 %v632_v2, %v73_v63 }
  0x35   :  { %v269_v14 = vmax.f32 %v205_v5, 0.0  ;;  %594 = vst [vmem:[%s1052_s3 + $0xc8] sm:$0xff] %v538_v8   ;;  %v207_v18 = vadd.f32 %v637_v3, %v139_v10  ;;  %v270_v19 = vmax.f32 %v206_v11, 0.0  ;;  %v142_v20 = vmul.f32 %v632_v2, %v74_v6 }
  0x36   :  { %v143_v21 = vmul.f32 %v632_v2, %v75_v7  ;;  %595 = vst [vmem:[%s1052_s3 + $0xd0] sm:$0xff] %v543_v13   ;;  %v208_v23 = vadd.f32 %v637_v3, %v140_v15  ;;  %v209_v24 = vadd.f32 %v637_v3, %v141_v16  ;;  %v144_v25 = vmul.f32 %v632_v2, %v76_v12 }
  0x37   :  { %v548_v22 = vpack.c.bf16 %v269_v14, %v268_v9  ;;  %v271_v26 = vmax.f32 %v207_v18, 0.0  ;;  %v210_v27 = vadd.f32 %v637_v3, %v142_v20  ;;  %v145_v29 = vmul.f32 %v632_v2, %v77_v17 }
  0x38   :  { %v211_v28 = vadd.f32 %v637_v3, %v143_v21  ;;  %v272_v30 = vmax.f32 %v208_v23, 0.0  ;;  %v273_v31 = vmax.f32 %v209_v24, 0.0  ;;  %v212_v32 = vadd.f32 %v637_v3, %v144_v25 }
  0x39   :  { %596 = vst [vmem:[%s1052_s3 + $0xd8] sm:$0xff] %v548_v22   ;;  %v553_v33 = vpack.c.bf16 %v271_v26, %v270_v19  ;;  %v274_v34 = vmax.f32 %v210_v27, 0.0  ;;  %v213_v36 = vadd.f32 %v637_v3, %v145_v29 }
  0x3a   :  { %v275_v35 = vmax.f32 %v211_v28, 0.0  ;;  %v558_v37 = vpack.c.bf16 %v273_v31, %v272_v30  ;;  %v276_v38 = vmax.f32 %v212_v32, 0.0 }
  0x3b   :  { %597 = vst [vmem:[%s1052_s3 + $0xe0] sm:$0xff] %v553_v33   ;;  %v277_v39 = vmax.f32 %v213_v36, 0.0 }
  0x3c   :  { %v563_v2 = vpack.c.bf16 %v275_v35, %v274_v34  ;;  %598 = vst [vmem:[%s1052_s3 + $0xe8] sm:$0xff] %v558_v37  }
  0x3d   :  { %v568_v40 = vpack.c.bf16 %v277_v39, %v276_v38 }
  0x3e   :  { %599 = vst [vmem:[%s1052_s3 + $0xf0] sm:$0xff] %v563_v2  }
  0x3f   :  { %600 = vst [vmem:[%s1052_s3 + $0xf8] sm:$0xff] %v568_v40  }

// kernel: conv_block_forward.7
= control target key start
LH: loop header
LB: loop body
LE: loop exit
PB: predicated region body
PF: predicated region fallthrough
CT: control target
= control target key end

     0   :  { %s893_s0 = inlined_call_operand.vmem [shape: f32[512,128], index: 0, kind: input, shape index: {}]   ;;  %s894_s1 = inlined_call_operand.vmem [shape: f32[1,128], index: 1, kind: input, shape index: {}]   ;;  %s895_s2 = inlined_call_operand.vmem [shape: f32[1,128], index: 2, kind: input, shape index: {}]   ;;  %s896_s3 = inlined_call_operand.vmem [shape: f32[512,128], index: 3, kind: output, shape index: {}]  }
   0x1   :  { %v14_v0 = vld [vmem:[%s893_s0] sm:$0xff]  ;;  %v15_v3 = vld [vmem:[%s893_s0 + $0x8] sm:$0xff]  ;;  %v16_v6 = vld [vmem:[%s893_s0 + $0x10] sm:$0xff] }
   0x2   :  { %v374_v1 = vld [vmem:[%s894_s1] ss:$0 sm:$0xff]  ;;  %v17_v7 = vld [vmem:[%s893_s0 + $0x18] sm:$0xff]  ;;  %v19_v12 = vld [vmem:[%s893_s0 + $0x28] sm:$0xff] }
   0x3   :  { %v379_v2 = vld [vmem:[%s895_s2] ss:$0 sm:$0xff]  ;;  %v82_v4 = vmul.f32 %v374_v1, %v14_v0  ;;  %v83_v5 = vmul.f32 %v374_v1, %v15_v3  ;;  %v84_v9 = vmul.f32 %v374_v1, %v16_v6  ;;  %v85_v10 = vmul.f32 %v374_v1, %v17_v7  ;;  %v20_v13 = vld [vmem:[%s893_s0 + $0x30] sm:$0xff]  ;;  %v21_v14 = vld [vmem:[%s893_s0 + $0x38] sm:$0xff] }
   0x4   :  { %v18_v8 = vld [vmem:[%s893_s0 + $0x20] sm:$0xff]  ;;  %v87_v17 = vmul.f32 %v374_v1, %v19_v12  ;;  %v88_v18 = vmul.f32 %v374_v1, %v20_v13  ;;  %v89_v22 = vmul.f32 %v374_v1, %v21_v14  ;;  %v23_v24 = vld [vmem:[%s893_s0 + $0x48] sm:$0xff]  ;;  %v24_v29 = vld [vmem:[%s893_s0 + $0x50] sm:$0xff] }
   0x5   :  { %v86_v11 = vmul.f32 %v374_v1, %v18_v8  ;;  %v150_v15 = vadd.f32 %v379_v2, %v82_v4  ;;  %v151_v16 = vadd.f32 %v379_v2, %v83_v5  ;;  %v152_v19 = vadd.f32 %v379_v2, %v84_v9  ;;  %v22_v23 = vld [vmem:[%s893_s0 + $0x40] sm:$0xff]  ;;  %v25_v30 = vld [vmem:[%s893_s0 + $0x58] sm:$0xff]  ;;  %v27_v35 = vld [vmem:[%s893_s0 + $0x68] sm:$0xff] }
   0x6   :  { %v153_v20 = vadd.f32 %v379_v2, %v85_v10  ;;  %v155_v27 = vadd.f32 %v379_v2, %v87_v17  ;;  %v156_v28 = vadd.f32 %v379_v2, %v88_v18  ;;  %v26_v31 = vld [vmem:[%s893_s0 + $0x60] sm:$0xff]  ;;  %v157_v34 = vadd.f32 %v379_v2, %v89_v22  ;;  %v28_v36 = vld [vmem:[%s893_s0 + $0x70] sm:$0xff]  ;;  %v29_v41 = vld [vmem:[%s893_s0 + $0x78] sm:$0xff] }
   0x7   :  { %v154_v21 = vadd.f32 %v379_v2, %v86_v11  ;;  %v214_v25 = vmax.f32 %v150_v15, 0.0  ;;  %v215_v26 = vmax.f32 %v151_v16, 0.0  ;;  %v216_v32 = vmax.f32 %v152_v19, 0.0  ;;  %v30_v54 = vld [vmem:[%s893_s0 + $0x80] sm:$0xff]  ;;  %v31_v55 = vld [vmem:[%s893_s0 + $0x88] sm:$0xff]  ;;  %v32_v58 = vld [vmem:[%s893_s0 + $0x90] sm:$0xff] }
   0x8   :  { %v217_v33 = vmax.f32 %v153_v20, 0.0  ;;  %v219_v38 = vmax.f32 %v155_v27, 0.0  ;;  %v90_v39 = vmul.f32 %v374_v1, %v22_v23  ;;  %v91_v40 = vmul.f32 %v374_v1, %v23_v24  ;;  %v33_v59 = vld [vmem:[%s893_s0 + $0x98] sm:$0xff]  ;;  %v34_v62 = vld [vmem:[%s893_s0 + $0xa0] sm:$0xff]  ;;  %v35_v5 = vld [vmem:[%s893_s0 + $0xa8] sm:$0xff] }
   0x9   :  { %278 = vst [vmem:[%s896_s3] sm:$0xff] %v214_v25  ;;  %v218_v37 = vmax.f32 %v154_v21, 0.0  ;;  %v220_v42 = vmax.f32 %v156_v28, 0.0  ;;  %v92_v43 = vmul.f32 %v374_v1, %v24_v29  ;;  %v93_v44 = vmul.f32 %v374_v1, %v25_v30  ;;  %v36_v10 = vld [vmem:[%s893_s0 + $0xb0] sm:$0xff]  ;;  %v37_v14 = vld [vmem:[%s893_s0 + $0xb8] sm:$0xff]  ;;  %v38_v18 = vld [vmem:[%s893_s0 + $0xc0] sm:$0xff] }
   0xa   :  { %279 = vst [vmem:[%s896_s3 + $0x8] sm:$0xff] %v215_v26  ;;  %v94_v45 = vmul.f32 %v374_v1, %v26_v31  ;;  %v158_v46 = vadd.f32 %v379_v2, %v90_v39  ;;  %v159_v47 = vadd.f32 %v379_v2, %v91_v40  ;;  %v95_v48 = vmul.f32 %v374_v1, %v27_v35  ;;  %v39_v22 = vld [vmem:[%s893_s0 + $0xc8] sm:$0xff]  ;;  %v40_v26 = vld [vmem:[%s893_s0 + $0xd0] sm:$0xff]  ;;  %v41_v30 = vld [vmem:[%s893_s0 + $0xd8] sm:$0xff] }
   0xb   :  { %280 = vst [vmem:[%s896_s3 + $0x10] sm:$0xff] %v216_v32  ;;  %v96_v49 = vmul.f32 %v374_v1, %v28_v36  ;;  %v221_v50 = vmax.f32 %v157_v34, 0.0  ;;  %v160_v51 = vadd.f32 %v379_v2, %v92_v43  ;;  %v161_v52 = vadd.f32 %v379_v2, %v93_v44  ;;  %v42_v34 = vld [vmem:[%s893_s0 + $0xe0] sm:$0xff] }
   0xc   :  { %281 = vst [vmem:[%s896_s3 + $0x18] sm:$0xff] %v217_v33  ;;  %v97_v53 = vmul.f32 %v374_v1, %v29_v41  ;;  %v222_v56 = vmax.f32 %v158_v46, 0.0  ;;  %v162_v57 = vadd.f32 %v379_v2, %v94_v45  ;;  %v223_v60 = vmax.f32 %v159_v47, 0.0  ;;  %v45_v46 = vld [vmem:[%s893_s0 + $0xf8] sm:$0xff] }
   0xd   :  { %282 = vst [vmem:[%s896_s3 + $0x20] sm:$0xff] %v218_v37  ;;  %v163_v61 = vadd.f32 %v379_v2, %v95_v48  ;;  %v224_v63 = vmax.f32 %v160_v51, 0.0  ;;  %v164_v0 = vadd.f32 %v379_v2, %v96_v49  ;;  %v98_v3 = vmul.f32 %v374_v1, %v30_v54  ;;  %v47_v54 = vld [vmem:[%s893_s0 + $0x108] sm:$0xff] }
   0xe   :  { %283 = vst [vmem:[%s896_s3 + $0x28] sm:$0xff] %v219_v38  ;;  %v99_v4 = vmul.f32 %v374_v1, %v31_v55  ;;  %v225_v6 = vmax.f32 %v161_v52, 0.0  ;;  %v165_v7 = vadd.f32 %v379_v2, %v97_v53  ;;  %v100_v8 = vmul.f32 %v374_v1, %v32_v58  ;;  %v43_v38 = vld [vmem:[%s893_s0 + $0xe8] sm:$0xff]  ;;  %v48_v58 = vld [vmem:[%s893_s0 + $0x110] sm:$0xff] }
   0xf   :  { %284 = vst [vmem:[%s896_s3 + $0x30] sm:$0xff] %v220_v42  ;;  %v101_v9 = vmul.f32 %v374_v1, %v33_v59  ;;  %v226_v11 = vmax.f32 %v162_v57, 0.0  ;;  %v166_v12 = vadd.f32 %v379_v2, %v98_v3  ;;  %v102_v13 = vmul.f32 %v374_v1, %v34_v62  ;;  %v44_v42 = vld [vmem:[%s893_s0 + $0xf0] sm:$0xff]  ;;  %v49_v62 = vld [vmem:[%s893_s0 + $0x118] sm:$0xff] }
  0x10   :  { %285 = vst [vmem:[%s896_s3 + $0x38] sm:$0xff] %v221_v50  ;;  %v227_v15 = vmax.f32 %v163_v61, 0.0  ;;  %v167_v16 = vadd.f32 %v379_v2, %v99_v4  ;;  %v103_v17 = vmul.f32 %v374_v1, %v35_v5  ;;  %v228_v19 = vmax.f32 %v164_v0, 0.0  ;;  %v46_v50 = vld [vmem:[%s893_s0 + $0x100] sm:$0xff] }
  0x11   :  { %286 = vst [vmem:[%s896_s3 + $0x40] sm:$0xff] %v222_v56  ;;  %v168_v20 = vadd.f32 %v379_v2, %v100_v8  ;;  %v104_v21 = vmul.f32 %v374_v1, %v36_v10  ;;  %v229_v23 = vmax.f32 %v165_v7, 0.0  ;;  %v169_v24 = vadd.f32 %v379_v2, %v101_v9  ;;  %v50_v4 = vld [vmem:[%s893_s0 + $0x120] sm:$0xff]  ;;  %v51_v8 = vld [vmem:[%s893_s0 + $0x128] sm:$0xff] }
  0x12   :  { %287 = vst [vmem:[%s896_s3 + $0x48] sm:$0xff] %v223_v60  ;;  %v105_v25 = vmul.f32 %v374_v1, %v37_v14  ;;  %v230_v27 = vmax.f32 %v166_v12, 0.0  ;;  %v170_v28 = vadd.f32 %v379_v2, %v102_v13  ;;  %v106_v29 = vmul.f32 %v374_v1, %v38_v18  ;;  %v52_v12 = vld [vmem:[%s893_s0 + $0x130] sm:$0xff] }
  0x13   :  { %288 = vst [vmem:[%s896_s3 + $0x50] sm:$0xff] %v224_v63  ;;  %v231_v31 = vmax.f32 %v167_v16, 0.0  ;;  %v171_v32 = vadd.f32 %v379_v2, %v103_v17  ;;  %v107_v33 = vmul.f32 %v374_v1, %v39_v22  ;;  %v232_v35 = vmax.f32 %v168_v20, 0.0  ;;  %v53_v16 = vld [vmem:[%s893_s0 + $0x138] sm:$0xff]  ;;  %v54_v20 = vld [vmem:[%s893_s0 + $0x140] sm:$0xff] }
  0x14   :  { %289 = vst [vmem:[%s896_s3 + $0x58] sm:$0xff] %v225_v6  ;;  %v172_v36 = vadd.f32 %v379_v2, %v104_v21  ;;  %v108_v37 = vmul.f32 %v374_v1, %v40_v26  ;;  %v233_v39 = vmax.f32 %v169_v24, 0.0  ;;  %v173_v40 = vadd.f32 %v379_v2, %v105_v25  ;;  %v55_v24 = vld [vmem:[%s893_s0 + $0x148] sm:$0xff] }
  0x15   :  { %290 = vst [vmem:[%s896_s3 + $0x60] sm:$0xff] %v226_v11  ;;  %v109_v41 = vmul.f32 %v374_v1, %v41_v30  ;;  %v234_v43 = vmax.f32 %v170_v28, 0.0  ;;  %v174_v44 = vadd.f32 %v379_v2, %v106_v29  ;;  %v110_v45 = vmul.f32 %v374_v1, %v42_v34  ;;  %v56_v28 = vld [vmem:[%s893_s0 + $0x150] sm:$0xff] }
  0x16   :  { %291 = vst [vmem:[%s896_s3 + $0x68] sm:$0xff] %v227_v15  ;;  %v235_v47 = vmax.f32 %v171_v32, 0.0  ;;  %v175_v48 = vadd.f32 %v379_v2, %v107_v33  ;;  %v111_v49 = vmul.f32 %v374_v1, %v43_v38  ;;  %v236_v51 = vmax.f32 %v172_v36, 0.0  ;;  %v57_v32 = vld [vmem:[%s893_s0 + $0x158] sm:$0xff]  ;;  %v58_v36 = vld [vmem:[%s893_s0 + $0x160] sm:$0xff] }
  0x17   :  { %292 = vst [vmem:[%s896_s3 + $0x70] sm:$0xff] %v228_v19  ;;  %v176_v52 = vadd.f32 %v379_v2, %v108_v37  ;;  %v112_v53 = vmul.f32 %v374_v1, %v44_v42  ;;  %v237_v55 = vmax.f32 %v173_v40, 0.0  ;;  %v177_v56 = vadd.f32 %v379_v2, %v109_v41  ;;  %v59_v40 = vld [vmem:[%s893_s0 + $0x168] sm:$0xff] }
  0x18   :  { %293 = vst [vmem:[%s896_s3 + $0x78] sm:$0xff] %v229_v23  ;;  %v113_v57 = vmul.f32 %v374_v1, %v45_v46  ;;  %v238_v59 = vmax.f32 %v174_v44, 0.0  ;;  %v178_v60 = vadd.f32 %v379_v2, %v110_v45  ;;  %v114_v61 = vmul.f32 %v374_v1, %v46_v50  ;;  %v60_v44 = vld [vmem:[%s893_s0 + $0x170] sm:$0xff] }
  0x19   :  { %294 = vst [vmem:[%s896_s3 + $0x80] sm:$0xff] %v230_v27  ;;  %v239_v63 = vmax.f32 %v175_v48, 0.0  ;;  %v179_v0 = vadd.f32 %v379_v2, %v111_v49  ;;  %v115_v3 = vmul.f32 %v374_v1, %v47_v54  ;;  %v240_v5 = vmax.f32 %v176_v52, 0.0  ;;  %v61_v48 = vld [vmem:[%s893_s0 + $0x178] sm:$0xff]  ;;  %v62_v52 = vld [vmem:[%s893_s0 + $0x180] sm:$0xff] }
  0x1a   :  { %295 = vst [vmem:[%s896_s3 + $0x88] sm:$0xff] %v231_v31  ;;  %v180_v6 = vadd.f32 %v379_v2, %v112_v53  ;;  %v116_v7 = vmul.f32 %v374_v1, %v48_v58  ;;  %v241_v9 = vmax.f32 %v177_v56, 0.0  ;;  %v181_v10 = vadd.f32 %v379_v2, %v113_v57  ;;  %v63_v56 = vld [vmem:[%s893_s0 + $0x188] sm:$0xff] }
  0x1b   :  { %296 = vst [vmem:[%s896_s3 + $0x90] sm:$0xff] %v232_v35  ;;  %v117_v11 = vmul.f32 %v374_v1, %v49_v62  ;;  %v242_v13 = vmax.f32 %v178_v60, 0.0  ;;  %v182_v14 = vadd.f32 %v379_v2, %v114_v61  ;;  %v118_v15 = vmul.f32 %v374_v1, %v50_v4  ;;  %v64_v60 = vld [vmem:[%s893_s0 + $0x190] sm:$0xff] }
  0x1c   :  { %297 = vst [vmem:[%s896_s3 + $0x98] sm:$0xff] %v233_v39  ;;  %v243_v17 = vmax.f32 %v179_v0, 0.0  ;;  %v183_v18 = vadd.f32 %v379_v2, %v115_v3  ;;  %v119_v19 = vmul.f32 %v374_v1, %v51_v8  ;;  %v244_v21 = vmax.f32 %v180_v6, 0.0  ;;  %v65_v0 = vld [vmem:[%s893_s0 + $0x198] sm:$0xff] }
  0x1d   :  { %298 = vst [vmem:[%s896_s3 + $0xa0] sm:$0xff] %v234_v43  ;;  %v184_v22 = vadd.f32 %v379_v2, %v116_v7  ;;  %v120_v23 = vmul.f32 %v374_v1, %v52_v12  ;;  %v245_v25 = vmax.f32 %v181_v10, 0.0  ;;  %v185_v26 = vadd.f32 %v379_v2, %v117_v11  ;;  %v77_v3 = vld [vmem:[%s893_s0 + $0x1f8] sm:$0xff]  ;;  %v66_v7 = vld [vmem:[%s893_s0 + $0x1a0] sm:$0xff]  ;;  %v67_v11 = vld [vmem:[%s893_s0 + $0x1a8] sm:$0xff] }
  0x1e   :  { %299 = vst [vmem:[%s896_s3 + $0xa8] sm:$0xff] %v235_v47  ;;  %v121_v27 = vmul.f32 %v374_v1, %v53_v16  ;;  %v246_v29 = vmax.f32 %v182_v14, 0.0  ;;  %v186_v30 = vadd.f32 %v379_v2, %v118_v15  ;;  %v122_v31 = vmul.f32 %v374_v1, %v54_v20  ;;  %v68_v15 = vld [vmem:[%s893_s0 + $0x1b0] sm:$0xff]  ;;  %v69_v20 = vld [vmem:[%s893_s0 + $0x1b8] sm:$0xff] }
  0x1f   :  { %300 = vst [vmem:[%s896_s3 + $0xb0] sm:$0xff] %v236_v51  ;;  %v247_v33 = vmax.f32 %v183_v18, 0.0  ;;  %v187_v34 = vadd.f32 %v379_v2, %v119_v19  ;;  %v123_v35 = vmul.f32 %v374_v1, %v55_v24  ;;  %v248_v37 = vmax.f32 %v184_v22, 0.0  ;;  %v70_v24 = vld [vmem:[%s893_s0 + $0x1c0] sm:$0xff] }
  0x20   :  { %301 = vst [vmem:[%s896_s3 + $0xb8] sm:$0xff] %v237_v55  ;;  %v188_v38 = vadd.f32 %v379_v2, %v120_v23  ;;  %v124_v39 = vmul.f32 %v374_v1, %v56_v28  ;;  %v249_v41 = vmax.f32 %v185_v26, 0.0  ;;  %v189_v42 = vadd.f32 %v379_v2, %v121_v27 }
  0x21   :  { %302 = vst [vmem:[%s896_s3 + $0xc0] sm:$0xff] %v238_v59  ;;  %v125_v43 = vmul.f32 %v374_v1, %v57_v32  ;;  %v250_v45 = vmax.f32 %v186_v30, 0.0  ;;  %v190_v46 = vadd.f32 %v379_v2, %v122_v31  ;;  %v126_v47 = vmul.f32 %v374_v1, %v58_v36 }
  0x22   :  { %303 = vst [vmem:[%s896_s3 + $0xc8] sm:$0xff] %v239_v63  ;;  %v251_v49 = vmax.f32 %v187_v34, 0.0  ;;  %v191_v50 = vadd.f32 %v379_v2, %v123_v35  ;;  %v127_v51 = vmul.f32 %v374_v1, %v59_v40  ;;  %v252_v53 = vmax.f32 %v188_v38, 0.0 }
  0x23   :  { %304 = vst [vmem:[%s896_s3 + $0xd0] sm:$0xff] %v240_v5  ;;  %v192_v54 = vadd.f32 %v379_v2, %v124_v39  ;;  %v128_v55 = vmul.f32 %v374_v1, %v60_v44  ;;  %v253_v57 = vmax.f32 %v189_v42, 0.0  ;;  %v193_v58 = vadd.f32 %v379_v2, %v125_v43 }
  0x24   :  { %305 = vst [vmem:[%s896_s3 + $0xd8] sm:$0xff] %v241_v9  ;;  %v129_v59 = vmul.f32 %v374_v1, %v61_v48  ;;  %v254_v61 = vmax.f32 %v190_v46, 0.0  ;;  %v194_v62 = vadd.f32 %v379_v2, %v126_v47  ;;  %v130_v63 = vmul.f32 %v374_v1, %v62_v52 }
  0x25   :  { %306 = vst [vmem:[%s896_s3 + $0xe0] sm:$0xff] %v242_v13  ;;  %v255_v4 = vmax.f32 %v191_v50, 0.0  ;;  %v195_v5 = vadd.f32 %v379_v2, %v127_v51  ;;  %v131_v6 = vmul.f32 %v374_v1, %v63_v56  ;;  %v256_v8 = vmax.f32 %v192_v54, 0.0 }
  0x26   :  { %307 = vst [vmem:[%s896_s3 + $0xe8] sm:$0xff] %v243_v17  ;;  %v196_v9 = vadd.f32 %v379_v2, %v128_v55  ;;  %v132_v10 = vmul.f32 %v374_v1, %v64_v60  ;;  %v257_v12 = vmax.f32 %v193_v58, 0.0  ;;  %v197_v13 = vadd.f32 %v379_v2, %v129_v59 }
  0x27   :  { %308 = vst [vmem:[%s896_s3 + $0xf0] sm:$0xff] %v244_v21  ;;  %v133_v14 = vmul.f32 %v374_v1, %v65_v0  ;;  %v145_v16 = vmul.f32 %v374_v1, %v77_v3  ;;  %v258_v17 = vmax.f32 %v194_v62, 0.0  ;;  %v198_v18 = vadd.f32 %v379_v2, %v130_v63 }
  0x28   :  { %309 = vst [vmem:[%s896_s3 + $0xf8] sm:$0xff] %v245_v25  ;;  %v134_v19 = vmul.f32 %v374_v1, %v66_v7  ;;  %v259_v21 = vmax.f32 %v195_v5, 0.0  ;;  %v199_v22 = vadd.f32 %v379_v2, %v131_v6  ;;  %v135_v23 = vmul.f32 %v374_v1, %v67_v11 }
  0x29   :  { %310 = vst [vmem:[%s896_s3 + $0x100] sm:$0xff] %v246_v29  ;;  %v784_v25 = vadd.f32 %v379_v2, %v145_v16  ;;  %v260_v26 = vmax.f32 %v196_v9, 0.0  ;;  %v200_v27 = vadd.f32 %v379_v2, %v132_v10  ;;  %v136_v28 = vmul.f32 %v374_v1, %v68_v15  ;;  %v71_v29 = vld [vmem:[%s893_s0 + $0x1c8] sm:$0xff] }
  0x2a   :  { %311 = vst [vmem:[%s896_s3 + $0x108] sm:$0xff] %v247_v33  ;;  %v261_v30 = vmax.f32 %v197_v13, 0.0  ;;  %v201_v31 = vadd.f32 %v379_v2, %v133_v14  ;;  %v137_v32 = vmul.f32 %v374_v1, %v69_v20  ;;  %v72_v33 = vld [vmem:[%s893_s0 + $0x1d0] sm:$0xff]  ;;  %v262_v34 = vmax.f32 %v198_v18, 0.0 }
  0x2b   :  { %312 = vst [vmem:[%s896_s3 + $0x110] sm:$0xff] %v248_v37  ;;  %v202_v35 = vadd.f32 %v379_v2, %v134_v19  ;;  %v138_v36 = vmul.f32 %v374_v1, %v70_v24  ;;  %v73_v37 = vld [vmem:[%s893_s0 + $0x1d8] sm:$0xff]  ;;  %v263_v38 = vmax.f32 %v199_v22, 0.0  ;;  %v203_v39 = vadd.f32 %v379_v2, %v135_v23 }
  0x2c   :  { %313 = vst [vmem:[%s896_s3 + $0x118] sm:$0xff] %v249_v41  ;;  %v139_v40 = vmul.f32 %v374_v1, %v71_v29  ;;  %v74_v41 = vld [vmem:[%s893_s0 + $0x1e0] sm:$0xff]  ;;  %v264_v42 = vmax.f32 %v200_v27, 0.0  ;;  %v204_v43 = vadd.f32 %v379_v2, %v136_v28  ;;  %v140_v44 = vmul.f32 %v374_v1, %v72_v33 }
  0x2d   :  { %314 = vst [vmem:[%s896_s3 + $0x120] sm:$0xff] %v250_v45  ;;  %v75_v45 = vld [vmem:[%s893_s0 + $0x1e8] sm:$0xff]  ;;  %v265_v46 = vmax.f32 %v201_v31, 0.0  ;;  %v205_v47 = vadd.f32 %v379_v2, %v137_v32  ;;  %v141_v48 = vmul.f32 %v374_v1, %v73_v37  ;;  %v266_v50 = vmax.f32 %v202_v35, 0.0 }
  0x2e   :  { %315 = vst [vmem:[%s896_s3 + $0x128] sm:$0xff] %v251_v49  ;;  %v76_v49 = vld [vmem:[%s893_s0 + $0x1f0] sm:$0xff]  ;;  %v206_v51 = vadd.f32 %v379_v2, %v138_v36  ;;  %v142_v52 = vmul.f32 %v374_v1, %v74_v41  ;;  %v207_v54 = vadd.f32 %v379_v2, %v139_v40  ;;  %v143_v55 = vmul.f32 %v374_v1, %v75_v45 }
  0x2f   :  { %316 = vst [vmem:[%s896_s3 + $0x130] sm:$0xff] %v252_v53  ;;  %v267_v53 = vmax.f32 %v203_v39, 0.0  ;;  %v268_v56 = vmax.f32 %v204_v43, 0.0  ;;  %v144_v58 = vmul.f32 %v374_v1, %v76_v49  ;;  %v269_v59 = vmax.f32 %v205_v47, 0.0 }
  0x30   :  { %317 = vst [vmem:[%s896_s3 + $0x138] sm:$0xff] %v253_v57  ;;  %v208_v57 = vadd.f32 %v379_v2, %v140_v44  ;;  %v209_v60 = vadd.f32 %v379_v2, %v141_v48  ;;  %v210_v62 = vadd.f32 %v379_v2, %v142_v52  ;;  %v271_v63 = vmax.f32 %v207_v54, 0.0 }
  0x31   :  { %318 = vst [vmem:[%s896_s3 + $0x140] sm:$0xff] %v254_v61  ;;  %v270_v61 = vmax.f32 %v206_v51, 0.0  ;;  %v211_v1 = vadd.f32 %v379_v2, %v143_v55  ;;  %v212_v3 = vadd.f32 %v379_v2, %v144_v58  ;;  %v277_v7 = vmax.f32 %v784_v25, 0.0 }
  0x32   :  { %319 = vst [vmem:[%s896_s3 + $0x148] sm:$0xff] %v255_v4  ;;  %v272_v0 = vmax.f32 %v208_v57, 0.0  ;;  %v273_v4 = vmax.f32 %v209_v60, 0.0  ;;  %v274_v5 = vmax.f32 %v210_v62, 0.0 }
  0x33   :  { %320 = vst [vmem:[%s896_s3 + $0x150] sm:$0xff] %v256_v8  ;;  %v275_v6 = vmax.f32 %v211_v1, 0.0  ;;  %v276_v2 = vmax.f32 %v212_v3, 0.0 }
  0x34   :  { %321 = vst [vmem:[%s896_s3 + $0x158] sm:$0xff] %v257_v12 }
  0x35   :  { %322 = vst [vmem:[%s896_s3 + $0x160] sm:$0xff] %v258_v17 }
  0x36   :  { %323 = vst [vmem:[%s896_s3 + $0x168] sm:$0xff] %v259_v21 }
  0x37   :  { %324 = vst [vmem:[%s896_s3 + $0x170] sm:$0xff] %v260_v26 }
  0x38   :  { %325 = vst [vmem:[%s896_s3 + $0x178] sm:$0xff] %v261_v30 }
  0x39   :  { %326 = vst [vmem:[%s896_s3 + $0x180] sm:$0xff] %v262_v34 }
  0x3a   :  { %327 = vst [vmem:[%s896_s3 + $0x188] sm:$0xff] %v263_v38 }
  0x3b   :  { %328 = vst [vmem:[%s896_s3 + $0x190] sm:$0xff] %v264_v42 }
  0x3c   :  { %329 = vst [vmem:[%s896_s3 + $0x198] sm:$0xff] %v265_v46 }
  0x3d   :  { %330 = vst [vmem:[%s896_s3 + $0x1a0] sm:$0xff] %v266_v50 }
  0x3e   :  { %331 = vst [vmem:[%s896_s3 + $0x1a8] sm:$0xff] %v267_v53 }
  0x3f   :  { %332 = vst [vmem:[%s896_s3 + $0x1b0] sm:$0xff] %v268_v56 }
  0x40   :  { %333 = vst [vmem:[%s896_s3 + $0x1b8] sm:$0xff] %v269_v59 }
  0x41   :  { %334 = vst [vmem:[%s896_s3 + $0x1c0] sm:$0xff] %v270_v61 }
  0x42   :  { %335 = vst [vmem:[%s896_s3 + $0x1c8] sm:$0xff] %v271_v63 }
  0x43   :  { %336 = vst [vmem:[%s896_s3 + $0x1d0] sm:$0xff] %v272_v0 }
  0x44   :  { %337 = vst [vmem:[%s896_s3 + $0x1d8] sm:$0xff] %v273_v4 }
  0x45   :  { %338 = vst [vmem:[%s896_s3 + $0x1e0] sm:$0xff] %v274_v5 }
  0x46   :  { %339 = vst [vmem:[%s896_s3 + $0x1e8] sm:$0xff] %v275_v6 }
  0x47   :  { %340 = vst [vmem:[%s896_s3 + $0x1f0] sm:$0xff] %v276_v2 }
  0x48   :  { %341 = vst [vmem:[%s896_s3 + $0x1f8] sm:$0xff] %v277_v7 }

// kernel: conv_block_forward.4
= control target key start
LH: loop header
LB: loop body
LE: loop exit
PB: predicated region body
PF: predicated region fallthrough
CT: control target
= control target key end

     0   :  { %s2097_s21 = smov 0   ;;  %s2099_s22 = smov 0   ;;  %s2434_s0 = inlined_call_operand.vmem [shape: bf16[2,18,18,128], index: 0, kind: input, shape index: {}, may-alias: {0,1,2}]   ;;  %s2435_s1 = inlined_call_operand.vmem [shape: bf16[2,18,18,128], index: 1, kind: input, shape index: {}, may-alias: {0,1,2}]   ;;  %s2436_s2 = inlined_call_operand.vmem [shape: bf16[2,18,18,128], index: 2, kind: input, shape index: {}, may-alias: {0,1,2}]   ;;  %s2437_s3 = inlined_call_operand.vmem [shape: bf16[3,3,128,128], index: 3, kind: input, shape index: {}]   ;;  %s2438_s4 = inlined_call_operand.vmem [shape: f32[2,16,16,128], index: 4, kind: output, shape index: {0}]   ;;  %s2439_s5 = inlined_call_operand.vmem [shape: f32[2,1,128], index: 5, kind: output, shape index: {1}]   ;;  %s2440_s6 = inlined_call_operand.vmem [shape: f32[2,1,128], index: 6, kind: output, shape index: {2}]  }
   0x1   :  { %2441 = sst [smem:[#allocation4_spill]] %s2434_s0  ;;  %s2101_s23 = smov 0  }
   0x2   :  { %2442 = sst [smem:[#allocation5_spill]] %s2439_s5  ;;  %s2103_s24 = smov 0  }
   0x3   :  { %2443 = sst [smem:[#allocation6_spill]] %s2440_s6  ;;  %s2105_s25 = smov 0  }
   0x4 LB: > { %s26_s26 = sadd.s32 1, %s2051_s23  ;;  %s29_s27 = sadd.s32 1, %s2055_s24  ;;  %s2059_s25 = sphi %s2105_s25, %s17_s25   ;;  %s2055_s24 = sphi %s2103_s24, %s2454_s24   ;;  %s2051_s23 = sphi %s2101_s23, %s2453_s23   ;;  %s2047_s22 = sphi %s2099_s22, %s2452_s22   ;;  %s2043_s21 = sphi %s2097_s21, %s2451_s21  }
   0x5   : > { %p27_p0 = scmp.ge.s32.totalorder %s26_s26, 16  ;;  %p1447_p1 = scmp.ge.s32.totalorder %s2059_s25, 1 }
   0x6   : > { %p277_p2 = scmp.lt.s32.totalorder %s2059_s25, 33 }
   0x7   : > { %s2456_s26 = smov (%p27_p0, %s26_s26), 0  ;;  %s2458_s27 = smov (!%p27_p0, %s29_s27), %s2055_s24 }
   0x8   : > { %2444 = sst [smem:[#allocation2_spill]] %s2456_s26  ;;  %p278_p3 = pnand %p1447_p1, %p277_p2 }
   0x9   : > { %p31_p4 = scmp.ge.s32.totalorder %s2458_s27, 2  ;;  %p341_p5 = scmp.lt.s32.totalorder (!%p278_p3), %s2047_s22, 1 }
   0xa   : > { %281 = sbr.rel (%p278_p3) target bundleno = 286 (0x11e), region = 36  ;;  %p343_p6 = scmp.lt.s32.totalorder (!%p278_p3), %s2043_s21, 17 }
   0xb   : > { %s2460_s27 = smov (%p31_p4, %s2458_s27), 0  ;;  %s350_s28 = sadd.s32 (!%p278_p3), 1, %s2043_s21 }
   0xc   : > { %2445 = sst [smem:[#allocation3_spill]] %s2460_s27  ;;  %s361_s29 = sadd.s32 (!%p278_p3), 2, %s2043_s21 }
   0xd   : > { %p353_p7 = scmp.lt.s32.totalorder (!%p278_p3), %s350_s28, 17  ;;  %p364_p8 = scmp.lt.s32.totalorder (!%p278_p3), %s361_s29, 17 }
   0xe   : > { %s2446_s0 = sld [smem:[#allocation4_spill]] (!%p278_p3)  ;;  %p374_p9 = scmp.lt.s32.totalorder (!%p278_p3), %s2043_s21, 15 }
   0xf   : > { %s2462_s22 = smov (!%p341_p5, %s2047_s22), 1  ;;  %s2464_s28 = smov (!%p353_p7, %s350_s28), 17 }
  0x10   : > { %s344_s30 = scalar_select %p343_p6, %s2043_s21, 17 }
  0x11   : > { %s1977_s7 = smul.u32 54, %s2462_s22  ;;  %s2447_s5 = sld [smem:[#allocation5_spill]] }
  0x12   : > { %s1976_s8 = smul.u32 3, %s344_s30  ;;  %s2448_s6 = sld [smem:[#allocation6_spill]] }
  0x13   : > { %s1978_s11 = smul.u32 3, %s2464_s28  ;;  %s2466_s29 = smov (!%p364_p8, %s361_s29), 17 }
  0x14   : > { %s347_s9 = sadd.s32 %s1977_s7, %s1976_s8  ;;  %p1454_p10 = scmp.ne.s32.totalorder %s2043_s21, 0 }
  0x15   : > { %s1448_s10 = sshll.u32 %s347_s9, 2  ;;  %s357_s15 = sadd.s32 %s1978_s11, %s1977_s7 }
  0x16   : > { %s2136_s14 = scalar_lea.vmem %s2446_s0, %s1448_s10  ;;  %s1449_s19 = sshll.u32 %s357_s15, 2 }
  0x17   : > { %s2142_s18 = scalar_lea.vmem %s2447_s5, %s2462_s22  ;;  %s2152_s27 = scalar_lea.vmem %s2435_s1, %s1449_s19 }
  0x18   : > { %s2147_s8 = scalar_lea.vmem %s2448_s6, %s2462_s22  ;;  %s1452_s10 = sshll.u32 %s2462_s22, 5 }
  0x19   : > { %s375_s12 = scalar_select %p374_p9, %s2043_s21, 15 }
  0x1a   : > { %s1979_s11 = smul.u32 3, %s2466_s29 }
  0x1b   : > { %s1451_s13 = sshll.u32 %s375_s12, 1  ;;  %390 = sbr.rel (%p1454_p10) target bundleno = 35 (0x23), region = 40 }
  0x1c   : > { %s368_s0 = sadd.s32 %s1979_s11, %s1977_s7  ;;  %s378_s16 = sadd.s32 %s1452_s10, %s1451_s13 }
  0x1d   : > { %s1450_s17 = sshll.u32 %s368_s0, 2  ;;  %s1453_s5 = sshll.u32 %s378_s16, 3 }
  0x1e   : > { %s2158_s20 = scalar_lea.vmem %s2436_s2, %s1450_s17  ;;  %s2163_s9 = scalar_lea.vmem %s2438_s4, %s1453_s5 }
  0x20   : > { %v2061_v0 = vmov 0.0  }
  0x21   : > { %391 = vst [vmem:[%s2142_s18] sm:$0x1] %v2061_v0 }
  0x22   : > { %392 = vst [vmem:[%s2147_s8] sm:$0x1] %v2061_v0 }
  0x23 PF: > { %v1896_v1 = vld [vmem:[%s2437_s3 + $0x78] sm:$0xff]  ;;  %v1895_v5 = vld [vmem:[%s2437_s3 + $0x70] sm:$0xff]  ;;  %v1894_v9 = vld [vmem:[%s2437_s3 + $0x68] sm:$0xff]  ;;  %vm437_vm0 = vsmask.f32 7424  ;;  %vm597_vm1 = vcmask 1046528  }
  0x24   : > { %v1904_v2 = vld [vmem:[%s2437_s3 + $0xb8] sm:$0xff]  ;;  %499 = vmatpush.bf16.msra.mxu0 %v1896_v1  ;;  %v1903_v6 = vld [vmem:[%s2437_s3 + $0xb0] sm:$0xff]  ;;  %v1902_v10 = vld [vmem:[%s2437_s3 + $0xa8] sm:$0xff] }
  0x25   : > { %v1888_v3 = vld [vmem:[%s2437_s3 + $0x38] sm:$0xff]  ;;  %650 = vmatpush.bf16.msra.mxu2 %v1904_v2  ;;  %v1887_v7 = vld [vmem:[%s2437_s3 + $0x30] sm:$0xff]  ;;  %v1886_v11 = vld [vmem:[%s2437_s3 + $0x28] sm:$0xff] }
  0x26   : > { %v1913_v4 = vld [vmem:[%s2437_s3 + $0xf8] sm:$0xff]  ;;  %562 = vmatpush.bf16.msra.mxu1 %v1888_v3  ;;  %v1912_v8 = vld [vmem:[%s2437_s3 + $0xf0] sm:$0xff]  ;;  %v1911_v12 = vld [vmem:[%s2437_s3 + $0xe8] sm:$0xff] }
  0x27   : > { %739 = vmatpush.bf16.msra.mxu3 %v1913_v4  ;;  %v1893_v13 = vld [vmem:[%s2437_s3 + $0x60] sm:$0xff]  ;;  %v1892_v17 = vld [vmem:[%s2437_s3 + $0x58] sm:$0xff]  ;;  %v411_v22 = vld [vmem:[%s2136_s14 + $0x8] sm:$0x1] }
  0x28   : > { %500 = vmatpush.bf16.msra.mxu0 %v1895_v5  ;;  %v1901_v14 = vld [vmem:[%s2437_s3 + $0xa0] sm:$0xff]  ;;  %v1900_v18 = vld [vmem:[%s2437_s3 + $0x98] sm:$0xff]  ;;  %v434_v23 = vunpack.c.l.b16 %v411_v22  ;;  %v1891_v24 = vld [vmem:[%s2437_s3 + $0x50] sm:$0xff] }
  0x29   : > { %651 = vmatpush.bf16.msra.mxu2 %v1903_v6  ;;  %v1885_v15 = vld [vmem:[%s2437_s3 + $0x20] sm:$0xff]  ;;  %v1884_v19 = vld [vmem:[%s2437_s3 + $0x18] sm:$0xff]  ;;  %v1899_v25 = vld [vmem:[%s2437_s3 + $0x90] sm:$0xff] }
  0x2a   : > { %563 = vmatpush.bf16.msra.mxu1 %v1887_v7  ;;  %v1910_v16 = vld [vmem:[%s2437_s3 + $0xe0] sm:$0xff]  ;;  %v1909_v20 = vld [vmem:[%s2437_s3 + $0xd8] sm:$0xff]  ;;  %v1883_v26 = vld [vmem:[%s2437_s3 + $0x10] sm:$0xff]  ;;  %v436_v28 = vpack.c.b16 %v434_v23, %v434_v23 }
  0x2b   : > { %740 = vmatpush.bf16.msra.mxu3 %v1912_v8  ;;  %v2229_v21 = vld [vmem:[%s2136_s14] sm:$0xff]   ;;  %v1908_v27 = vld [vmem:[%s2437_s3 + $0xd0] sm:$0xff]  ;;  %v1890_v32 = vld [vmem:[%s2437_s3 + $0x48] sm:$0xff] }
  0x2c   : > { %501 = vmatpush.bf16.msra.mxu0 %v1894_v9  ;;  %v441_v29 = vshll.u32 %v2229_v21, 16  ;;  %v1967_v30 = vld [vmem:[%s2136_s14] sm:$0xf0]  ;;  %v1968_v31 = vld [vmem:[%s2136_s14] sm:$0xe]  ;;  %v1898_v33 = vld [vmem:[%s2437_s3 + $0x88] sm:$0xff] }
  0x2d   : > { %652 = vmatpush.bf16.msra.mxu2 %v1902_v10  ;;  %v1882_v34 = vld [vmem:[%s2437_s3 + $0x8] sm:$0xff]  ;;  %v439_v36 = vshrl.u32 %v2229_v21, 16  ;;  %v446_v38 = vshll.u32 %v436_v28, 16  ;;  %v1969_v39 = vor.u32 %v1968_v31, %v1967_v30  ;;  %v1889_v40 = vld [vmem:[%s2437_s3 + $0x40] sm:$0xff]  ;;  %v1921_v42 = vld [vmem:[%s2437_s3 + $0x138] sm:$0xff]  ;;  %v599_v47 = vrot.slane %v436_v28, 1 }
  0x2e   : > { %564 = vmatpush.bf16.msra.mxu1 %v1886_v11  ;;  %v1907_v35 = vld [vmem:[%s2437_s3 + $0xc8] sm:$0xff]  ;;  %v443_v37 = vrot.slane %v441_v29, 1  ;;  %v1897_v41 = vld [vmem:[%s2437_s3 + $0x80] sm:$0xff]  ;;  %v1938_v43 = vld [vmem:[%s2437_s3 + $0x1b8] sm:$0xff] }
  0x2f   : > { %741 = vmatpush.bf16.msra.mxu3 %v1911_v12  ;;  %v448_v45 = vrot.slane %v446_v38, 1  ;;  %v598_v46 = vrot.slane %v1969_v39, 1  ;;  %v1881_v48 = vld [vmem:[%s2437_s3] sm:$0xff]  ;;  %v1929_v50 = vld [vmem:[%s2437_s3 + $0x178] sm:$0xff]  ;;  %v1920_v52 = vld [vmem:[%s2437_s3 + $0x130] sm:$0xff] }
  0x30   : > { %502 = vmatpush.bf16.msra.mxu0 %v1893_v13  ;;  %v444_v44 = vor.u32 %v443_v37, %v439_v36  ;;  %v1906_v49 = vld [vmem:[%s2437_s3 + $0xc0] sm:$0xff]  ;;  %v1946_v51 = vld [vmem:[%s2437_s3 + $0x1f8] sm:$0xff]  ;;  %v1937_v53 = vld [vmem:[%s2437_s3 + $0x1b0] sm:$0xff] }
  0x31   : > { %653 = vmatpush.bf16.msra.mxu2 %v1901_v14  ;;  %v600_v55 = vsel %vm597_vm1, %v598_v46, %v599_v47  ;;  %v1905_v56 = vld [vmem:[%s2152_s27] sm:$0xff]  ;;  %v1928_v57 = vld [vmem:[%s2437_s3 + $0x170] sm:$0xff]  ;;  %v1919_v59 = vld [vmem:[%s2437_s3 + $0x128] sm:$0xff] }
  0x32   : > { %565 = vmatpush.bf16.msra.mxu1 %v1885_v15  ;;  %v449_v54 = vsel %vm437_vm0, %v444_v44, %v448_v45  ;;  %v1945_v58 = vld [vmem:[%s2437_s3 + $0x1f0] sm:$0xff]  ;;  %v1936_v60 = vld [vmem:[%s2437_s3 + $0x1a8] sm:$0xff]  ;;  %v1918_v63 = vld [vmem:[%s2437_s3 + $0x120] sm:$0xff] }
  0x33   : > { %742 = vmatpush.bf16.msra.mxu3 %v1910_v16  ;;  %v1927_v61 = vld [vmem:[%s2437_s3 + $0x168] sm:$0xff]  ;;  %v1935_v0 = vld [vmem:[%s2437_s3 + $0x1a0] sm:$0xff]  ;;  %v1917_v5 = vld [vmem:[%s2437_s3 + $0x118] sm:$0xff] }
  0x34   : > { %503 = vmatpush.bf16.msra.mxu0 %v1892_v17  ;;  %v1944_v62 = vld [vmem:[%s2437_s3 + $0x1e8] sm:$0xff]  ;;  %v1926_v2 = vld [vmem:[%s2437_s3 + $0x160] sm:$0xff]  ;;  %v1934_v6 = vld [vmem:[%s2437_s3 + $0x198] sm:$0xff] }
  0x35   : > { %654 = vmatpush.bf16.msra.mxu2 %v1900_v18  ;;  %v757_v1 = vld [vmem:[%s2152_s27 + $0x8] sm:$0x1]  ;;  %v1943_v3 = vld [vmem:[%s2437_s3 + $0x1e0] sm:$0xff]  ;;  %v1925_v9 = vld [vmem:[%s2437_s3 + $0x158] sm:$0xff] }
  0x36   : > { %566 = vmatpush.bf16.msra.mxu1 %v1884_v19  ;;  %v1040_v4 = vld [vmem:[%s2158_s20 + $0x8] sm:$0x1]  ;;  %v780_v7 = vunpack.c.l.b16 %v757_v1  ;;  %v1960_v8 = vld [vmem:[%s2152_s27] sm:$0xff]   ;;  %v1942_v10 = vld [vmem:[%s2437_s3 + $0x1d8] sm:$0xff] }
  0x37   : > { %743 = vmatpush.bf16.msra.mxu3 %v1909_v20  ;;  %v1063_v11 = vunpack.c.l.b16 %v1040_v4  ;;  %v1964_v12 = vld [vmem:[%s2158_s20] sm:$0xff]   ;;  %v1916_v13 = vld [vmem:[%s2437_s3 + $0x110] sm:$0xff]  ;;  %v786_v16 = vshll.u32 %v1960_v8, 16  ;;  %v1915_v23 = vld [vmem:[%s2437_s3 + $0x108] sm:$0xff] }
  0x38   : > { %504 = vmatpush.bf16.msra.mxu0 %v1891_v24  ;;  %v1933_v14 = vld [vmem:[%s2437_s3 + $0x190] sm:$0xff]  ;;  %v782_v15 = vpack.c.b16 %v780_v7, %v780_v7  ;;  %v1069_v20 = vshll.u32 %v1964_v12, 16  ;;  %v1971_v22 = vld [vmem:[%s2152_s27] sm:$0xe]  ;;  %v1932_v24 = vld [vmem:[%s2437_s3 + $0x188] sm:$0xff]  ;;  %v1067_v31 = vshrl.u32 %v1964_v12, 16 }
  0x39   : > { %655 = vmatpush.bf16.msra.mxu2 %v1899_v25  ;;  %v1924_v17 = vld [vmem:[%s2437_s3 + $0x150] sm:$0xff]  ;;  %v2352_v19 = vpack.c.b16 %v1063_v11, %v1063_v11  ;;  %v784_v25 = vshrl.u32 %v1960_v8, 16  ;;  %v1923_v28 = vld [vmem:[%s2437_s3 + $0x148] sm:$0xff]  ;;  %v1954_v38 = vld [vmem:[%s2437_s3 + $0x238] sm:$0xff] }
  0x3a   : > { %567 = vmatpush.bf16.msra.mxu1 %v1883_v26  ;;  %v1941_v18 = vld [vmem:[%s2437_s3 + $0x1d0] sm:$0xff]  ;;  %v788_v26 = vrot.slane %v786_v16, 1  ;;  %v1940_v29 = vld [vmem:[%s2437_s3 + $0x1c8] sm:$0xff]  ;;  %v1922_v39 = vld [vmem:[%s2437_s3 + $0x140] sm:$0xff] }
  0x3b   : > { %744 = vmatpush.bf16.msra.mxu3 %v1908_v27  ;;  %v791_v27 = vshll.u32 %v782_v15, 16  ;;  %v1930_v45 = vld [vmem:[%s2158_s20] sm:$0xff] }
  0x3c   : > { %505 = vmatpush.bf16.msra.mxu0 %v1890_v32  ;;  %v1071_v32 = vrot.slane %v1069_v20, 1  ;;  %v789_v36 = vor.u32 %v788_v26, %v784_v25 }
  0x3d   : > { %656 = vmatpush.bf16.msra.mxu2 %v1898_v33  ;;  %v1074_v33 = vshll.u32 %v2352_v19, 16  ;;  %v793_v37 = vrot.slane %v791_v27, 1 }
  0x3e   : > { %568 = vmatpush.bf16.msra.mxu1 %v1882_v34  ;;  %v1914_v34 = vld [vmem:[%s2437_s3 + $0x100] sm:$0xff] }
  0x3f   : > { %745 = vmatpush.bf16.msra.mxu3 %v1907_v35  ;;  %v1931_v35 = vld [vmem:[%s2437_s3 + $0x180] sm:$0xff]  ;;  %v1076_v44 = vrot.slane %v1074_v33, 1  ;;  %v794_v46 = vsel %vm437_vm0, %v789_v36, %v793_v37 }
  0x40   : > { %506 = vmatpush.bf16.msra.mxu0 %v1889_v40  ;;  %v1939_v40 = vld [vmem:[%s2437_s3 + $0x1c0] sm:$0xff] }
  0x41   : > { %657 = vmatpush.bf16.msra.mxu2 %v1897_v41 }
  0x42   : > { %569 = vmatpush.bf16.msra.mxu1 %v1881_v48 }
  0x43   : > { %746 = vmatpush.bf16.msra.mxu3 %v1906_v49  ;;  %507 = vmatmul.bf16.vlgmr.msra.gmra.mxu0 %v449_v54  ;;  %v1953_v49 = vld [vmem:[%s2437_s3 + $0x230] sm:$0xff]  ;;  %v1973_v54 = vld [vmem:[%s2158_s20] sm:$0xf0] }
  0x44   : > { %844 = vmatpush.bf16.msrb.mxu0 %v1921_v42  ;;  %658 = vmatmul.bf16.vlgmr.msra.gmra.mxu2 %v600_v55  ;;  %v882_v42 = vrot.slane %v782_v15, 1  ;;  %v1974_v55 = vld [vmem:[%s2158_s20] sm:$0xe] }
  0x45   : > { %1022 = vmatpush.bf16.msrb.mxu2 %v1938_v43  ;;  %570 = vmatmul.bf16.vlgmr.msra.gmra.mxu1 %v2229_v21  ;;  %v1970_v21 = vld [vmem:[%s2152_s27] sm:$0xf0]  ;;  %v1072_v43 = vor.u32 %v1071_v32, %v1067_v31 }
  0x46   : > { %933 = vmatpush.bf16.msrb.mxu1 %v1929_v50  ;;  %747 = vmatmul.bf16.vlgmr.msra.gmra.mxu3 %v1905_v56  ;;  %v1972_v30 = vor.u32 %v1971_v22, %v1970_v21  ;;  %v1952_v50 = vld [vmem:[%s2437_s3 + $0x228] sm:$0xff] }
  0x47   : > { %1127 = vmatpush.bf16.msrb.mxu3 %v1946_v51  ;;  %v1077_v48 = vsel %vm437_vm0, %v1072_v43, %v1076_v44  ;;  %v1951_v51 = vld [vmem:[%s2437_s3 + $0x220] sm:$0xff]  ;;  %v1948_v56 = vld [vmem:[%s2437_s3 + $0x208] sm:$0xff] }
  0x48   : > { %845 = vmatpush.bf16.msrb.mxu0 %v1920_v52  ;;  %v881_v41 = vrot.slane %v1972_v30, 1  ;;  %v1950_v52 = vld [vmem:[%s2437_s3 + $0x218] sm:$0xff] }
  0x49   : > { %1023 = vmatpush.bf16.msrb.mxu2 %v1937_v53  ;;  %v1949_v53 = vld [vmem:[%s2437_s3 + $0x210] sm:$0xff] }
  0x4a   : > { %934 = vmatpush.bf16.msrb.mxu1 %v1928_v57  ;;  %v883_v47 = vsel %vm597_vm1, %v881_v41, %v882_v42  ;;  %v1975_v57 = vor.u32 %v1974_v55, %v1973_v54 }
  0x4b   : > { %1128 = vmatpush.bf16.msrb.mxu3 %v1945_v58  ;;  %v1947_v58 = vld [vmem:[%s2437_s3 + $0x200] sm:$0xff] }
  0x4c   : > { %846 = vmatpush.bf16.msrb.mxu0 %v1919_v59  ;;  %v1164_v59 = vrot.slane %v1975_v57, 1 }
  0x4d   : > { %1024 = vmatpush.bf16.msrb.mxu2 %v1936_v60  ;;  %v1165_v60 = vrot.slane %v2352_v19, 1 }
  0x4e   : > { %935 = vmatpush.bf16.msrb.mxu1 %v1927_v61 }
  0x4f   : > { %1129 = vmatpush.bf16.msrb.mxu3 %v1944_v62  ;;  %v1166_v61 = vsel %vm597_vm1, %v1164_v59, %v1165_v60 }
  0x50   : > { %847 = vmatpush.bf16.msrb.mxu0 %v1918_v63 }
  0x51   : > { %1025 = vmatpush.bf16.msrb.mxu2 %v1935_v0 }
  0x52   : > { %936 = vmatpush.bf16.msrb.mxu1 %v1926_v2 }
  0x53   : > { %1130 = vmatpush.bf16.msrb.mxu3 %v1943_v3 }
  0x54   : > { %848 = vmatpush.bf16.msrb.mxu0 %v1917_v5 }
  0x55   : > { %1026 = vmatpush.bf16.msrb.mxu2 %v1934_v6 }
  0x56   : > { %937 = vmatpush.bf16.msrb.mxu1 %v1925_v9 }
  0x57   : > { %1131 = vmatpush.bf16.msrb.mxu3 %v1942_v10 }
  0x58   : > { %849 = vmatpush.bf16.msrb.mxu0 %v1916_v13 }
  0x59   : > { %1027 = vmatpush.bf16.msrb.mxu2 %v1933_v14 }
  0x5a   : > { %938 = vmatpush.bf16.msrb.mxu1 %v1924_v17 }
  0x5b   : > { %1132 = vmatpush.bf16.msrb.mxu3 %v1941_v18 }
  0x5c   : > { %850 = vmatpush.bf16.msrb.mxu0 %v1915_v23 }
  0x5d   : > { %1028 = vmatpush.bf16.msrb.mxu2 %v1932_v24 }
  0x5e   : > { %939 = vmatpush.bf16.msrb.mxu1 %v1923_v28 }
  0x5f   : > { %1133 = vmatpush.bf16.msrb.mxu3 %v1940_v29 }
  0x60   : > { %851 = vmatpush.bf16.msrb.mxu0 %v1914_v34 }
  0x61   : > { %1029 = vmatpush.bf16.msrb.mxu2 %v1931_v35 }
  0x62   : > { %940 = vmatpush.bf16.msrb.mxu1 %v1922_v39 }
  0x63   : > { %1134 = vmatpush.bf16.msrb.mxu3 %v1939_v40  ;;  %852 = vmatmul.bf16.vlgmr.msrb.gmra.mxu0 %v794_v46 }
  0x64   : > { %1216 = vmatpush.bf16.msra.mxu0 %v1954_v38  ;;  %1030 = vmatmul.bf16.vlgmr.msrb.gmra.mxu2 %v1930_v45  ;;  %v1234_v45 = vld [vmem:[%s2142_s18] sm:$0x1] }
  0x65   : > { %941 = vmatmul.bf16.vlgmr.msrb.gmra.mxu1 %v883_v47 }
  0x66   : > { %1135 = vmatmul.bf16.vlgmr.msrb.gmra.mxu3 %v1077_v48  ;;  %v1244_v48 = vld [vmem:[%s2147_s8] sm:$0x1] }
  0x68   : > { %1217 = vmatpush.bf16.msra.mxu0 %v1953_v49 }
  0x6c   : > { %1218 = vmatpush.bf16.msra.mxu0 %v1952_v50 }
  0x70   : > { %1219 = vmatpush.bf16.msra.mxu0 %v1951_v51 }
  0x74   : > { %1220 = vmatpush.bf16.msra.mxu0 %v1950_v52 }
  0x78   : > { %1221 = vmatpush.bf16.msra.mxu0 %v1949_v53 }
  0x7c   : > { %1222 = vmatpush.bf16.msra.mxu0 %v1948_v56 }
  0x80   : > { %1223 = vmatpush.bf16.msra.mxu0 %v1947_v58 }
  0x83   : > { %1224 = vmatmul.bf16.vlgmr.msra.gmra.mxu0 %v1166_v61 }
  0xc0   : > { %v508_v62 = vpop.f32.mrf.mxu0 }
  0xc2   : > { %v571_v63 = vpop.f32.mrf.mxu1 }
  0xc3   : > { %v572_v3 = vadd.f32 %v571_v63, %v508_v62 }
  0xc7   : > { %v659_v0 = vpop.f32.mrf.mxu2 }
  0xc8   : > { %v510_v1 = vpop.f32.mrf.mxu0  ;;  %v664_v5 = vadd.f32 %v659_v0, %v572_v3 }
  0xc9   : > { %v748_v2 = vpop.f32.mrf.mxu3 }
  0xca   : > { %v573_v4 = vpop.f32.mrf.mxu1  ;;  %v753_v8 = vadd.f32 %v748_v2, %v664_v5 }
  0xcb   : > { %v574_v10 = vadd.f32 %v573_v4, %v510_v1 }
  0xcf   : > { %v661_v6 = vpop.f32.mrf.mxu2 }
  0xd0   : > { %v665_v14 = vadd.f32 %v661_v6, %v574_v10 }
  0xd1   : > { %v750_v9 = vpop.f32.mrf.mxu3 }
  0xd2   : > { %v754_v18 = vadd.f32 %v750_v9, %v665_v14 }
  0xe0   : > { %v853_v7 = vpop.f32.mrf.mxu0 }
  0xe1   : > { %v858_v11 = vadd.f32 %v853_v7, %v753_v8 }
  0xe2   : > { %v942_v12 = vpop.f32.mrf.mxu1 }
  0xe3   : > { %v947_v15 = vadd.f32 %v942_v12, %v858_v11 }
  0xe7   : > { %v1031_v13 = vpop.f32.mrf.mxu2 }
  0xe8   : > { %v855_v16 = vpop.f32.mrf.mxu0  ;;  %v1036_v19 = vadd.f32 %v1031_v13, %v947_v15 }
  0xe9   : > { %v1136_v17 = vpop.f32.mrf.mxu3  ;;  %v859_v20 = vadd.f32 %v855_v16, %v754_v18 }
  0xea   : > { %v944_v21 = vpop.f32.mrf.mxu1  ;;  %v1141_v22 = vadd.f32 %v1136_v17, %v1036_v19 }
  0xeb   : > { %v948_v25 = vadd.f32 %v944_v21, %v859_v20 }
  0xef   : > { %v1033_v23 = vpop.f32.mrf.mxu2 }
  0xf0   : > { %v1037_v27 = vadd.f32 %v1033_v23, %v948_v25 }
  0xf1   : > { %v1138_v28 = vpop.f32.mrf.mxu3 }
  0xf2   : > { %v1142_v29 = vadd.f32 %v1138_v28, %v1037_v27 }
 0x100   : > { %v1225_v24 = vpop.f32.mrf.mxu0 }
 0x101   : > { %v1230_v26 = vadd.f32 %v1225_v24, %v1141_v22 }
 0x103   : > { %1232 = vst [vmem:[%s2163_s9] sm:$0xff] %v1230_v26  ;;  %v1245_v32 = vmul.f32 %v1230_v26, %v1230_v26 }
 0x108   : > { %v1227_v30 = vpop.f32.mrf.mxu0 }
 0x109   : > { %v1231_v31 = vadd.f32 %v1227_v30, %v1142_v29 }
 0x10b   : > { %1233 = vst [vmem:[%s2163_s9 + $0x8] sm:$0xff] %v1231_v31  ;;  %v1235_v33 = vadd.f32 %v1231_v31, %v1230_v26  ;;  %v1246_v34 = vmul.f32 %v1231_v31, %v1231_v31 }
 0x10d   : > { %v1236_v35 = vrot.slane %v1235_v33, 4  ;;  %v1247_v36 = vadd.f32 %v1246_v34, %v1245_v32 }
 0x10f   : > { %v1237_v37 = vadd.f32 %v1236_v35, %v1235_v33  ;;  %v1248_v38 = vrot.slane %v1247_v36, 4 }
 0x111   : > { %v1238_v39 = vrot.slane %v1237_v37, 2  ;;  %v1249_v40 = vadd.f32 %v1248_v38, %v1247_v36 }
 0x113   : > { %v1239_v41 = vadd.f32 %v1238_v39, %v1237_v37  ;;  %v1250_v42 = vrot.slane %v1249_v40, 2 }
 0x115   : > { %v1240_v43 = vrot.slane %v1239_v41, 1  ;;  %v1251_v44 = vadd.f32 %v1250_v42, %v1249_v40 }
 0x117   : > { %v1241_v46 = vadd.f32 %v1240_v43, %v1239_v41  ;;  %v1252_v47 = vrot.slane %v1251_v44, 1 }
 0x119   : > { %v1242_v49 = vadd.f32 %v1241_v46, %v1234_v45  ;;  %v1253_v50 = vadd.f32 %v1252_v47, %v1251_v44 }
 0x11b   : > { %1243 = vst [vmem:[%s2142_s18] sm:$0x1] %v1242_v49  ;;  %v1254_v51 = vadd.f32 %v1253_v50, %v1244_v48 }
 0x11d   : > { %1255 = vst [vmem:[%s2147_s8] sm:$0x1] %v1254_v51 }
 0x11e PF: > { %s17_s25 = sadd.s32 1, %s2059_s25   ;;  %s2449_s20 = sld [smem:[#allocation2_spill]] }
 0x11f   : > { %p14_p11 = scmp.ge.s32.totalorder %s17_s25, 34   ;;  %s2450_s9 = sld [smem:[#allocation3_spill]] }
 0x120   : > { %s2451_s21 = smov %s2051_s23  ;;  %s2452_s22 = smov %s2055_s24 }
 0x121   :  { %16 = sbr.rel (!%p14_p11) target bundleno = 4 (0x4), region = 108 }
 0x124   : > { %s2453_s23 = smov %s2449_s20 }
 0x125   : > { %s2454_s24 = smov %s2450_s9 }

</bundles_post_ra>
